<compile_context>
chip_gen: v5e
topology: v5e:2x2
jax: 0.10.0
libtpu: 0.0.40
codegen_flags: <defaults>
</compile_context>

<pallas_src>
import jax
import jax.numpy as jnp
from jax.experimental import pallas as pl
from jax.experimental.pallas import tpu as pltpu


def _round_up(x, m):
    return (x + m - 1) // m * m


def _elu(x):
    # F.elu, alpha=1.0.  (exp-1 kept for a known-clean Mosaic lowering and
    # matched in the reference; expm1 would be marginally better near 0.)
    one = jnp.asarray(1.0, x.dtype)
    return jnp.where(x > 0, x, jnp.exp(x) - one)


def _chip_traits():
    """(two_tensorcores, bf16_elementwise_ok) — best-effort, correctness-neutral."""
    kind = ""
    try:
        kind = jax.devices()[0].device_kind.lower()
    except Exception:
        pass
    two_tc = "v7" in kind                                   # v7x: 2 TCs/chip
    bf16_vpu = not any(t in kind for t in ("v2", "v3", "v4", "v5"))
    return two_tc, bf16_vpu


def _select_tile_b(B, tile_b, two_tc, cap=8192):
    Bp128 = _round_up(B, 128)
    if tile_b is None:
        if two_tc and Bp128 >= 256:
            # at least 2 steps so both TensorCores get work on v7x
            tile_b = min(cap, _round_up(pl.cdiv(Bp128, 2), 128))
        else:
            # single-TC (v5e/v6e): one big step whenever it fits the cap
            tile_b = min(cap, Bp128)
    assert tile_b % 128 == 0
    return tile_b


# ---------------------------------------------------------------------------
# Shared MLP body (feature-major, returns pre-sigmoid logits z of shape (1, tile_b))
# ---------------------------------------------------------------------------
def _mlp_logits(refs, num_hidden_layers, in_dim, bf16_act):
    """refs = x, w0, b0, [w_i, b_i]*(num_hidden-1), w_out_col, b_out, ..."""
    x_ref = refs[0]                     # (in_dim, tile_b)  f32
    w0_ref, b0_ref = refs[1], refs[2]   # (H, in_dim) f32, (H, 1) f32
    idx = 3

    x = x_ref[...]
    w0 = w0_ref[...]

    # ---- layer 0: K = in_dim (tiny) -> VPU broadcast-FMAs, skip the MXU.
    # NOTE: (H,1) lane-broadcasts; pre-broadcast to (H,128) only if a trace
    # shows relayout traffic here.
    h = b0_ref[...] + w0[:, 0:1] * x[0:1, :]            # (H, tile_b) f32
    for k in range(1, in_dim):
        h = h + w0[:, k:k + 1] * x[k:k + 1, :]
    h = _elu(h.astype(jnp.bfloat16)) if bf16_act else _elu(h)

    # ---- remaining hidden layers: bf16 MXU operands, f32 accumulation.
    for _ in range(num_hidden_layers - 1):
        w_ref, b_ref = refs[idx], refs[idx + 1]
        idx += 2
        acc = jnp.dot(w_ref[...], h.astype(jnp.bfloat16),
                      preferred_element_type=jnp.float32) + b_ref[...]
        h = _elu(acc.astype(jnp.bfloat16)) if bf16_act else _elu(acc)

    # ---- output layer: M=1 -> VPU multiply + sublane (XLU) reduction, no MXU.
    w_out_ref, b_out_ref = refs[idx], refs[idx + 1]      # (H, 1) f32, (1, 1) f32
    z = jnp.sum(h.astype(jnp.float32) * w_out_ref[...],
                axis=0, keepdims=True) + b_out_ref[...]  # (1, tile_b) f32
    return z, idx + 2


def _make_probs_kernel(num_hidden_layers, in_dim, bf16_act):
    def kernel(*refs):
        z, idx = _mlp_logits(refs, num_hidden_layers, in_dim, bf16_act)
        o_ref = refs[idx]                                 # (1, tile_b)
        o_ref[...] = 1.0 / (1.0 + jnp.exp(-z))
    return kernel


def _make_bce_kernel(num_hidden_layers, in_dim, bf16_act, tile_b, n_pos, n_valid):
    """Fused Prob_Net + BCE partial sum.  Labels: col < n_pos -> 1, else 0."""
    def kernel(*refs):
        z, idx = _mlp_logits(refs, num_hidden_layers, in_dim, bf16_act)
        o_ref = refs[idx]                                 # (1, 128) partial-sum tile

        col = (pl.program_id(0) * tile_b
               + jax.lax.broadcasted_iota(jnp.int32, z.shape, 1))
        # -log sigmoid(z)  = softplus(-z) = max(-z,0) + log(1 + exp(-|z|))
        # -log(1-sigmoid)  = softplus(z)  = softplus(-z) + z
        sp_neg = jnp.maximum(-z, 0.0) + jnp.log(1.0 + jnp.exp(-jnp.abs(z)))
        sp_pos = sp_neg + z
        loss = jnp.where(col < n_pos, sp_neg, sp_pos)
        loss = jnp.minimum(loss, 100.0)                   # torch BCELoss -100 log clamp
        loss = jnp.where(col < n_valid, loss, 0.0)        # mask zero-padded columns
        partial = jnp.sum(loss, axis=1, keepdims=True)    # (1, 1)
        o_ref[...] = jnp.broadcast_to(partial, o_ref.shape)
    return kernel


# ---------------------------------------------------------------------------
# pallas_call wrappers
# ---------------------------------------------------------------------------
def _specs(in_dim, tile_b, flat_params):
    # Constant-index weight specs: Pallas keeps them resident (no per-step DMA).
    full = lambda arr: pl.BlockSpec(arr.shape, lambda i: (0, 0))
    return ([pl.BlockSpec((in_dim, tile_b), lambda i: (0, i))]
            + [full(a) for a in flat_params])


def prob_net_forward(x, params, *, tile_b=None):
    """x: (B, in_dim) f32.  Returns sigmoid probabilities, shape (B, 1)."""
    B, in_dim = x.shape
    num_hidden = len(params) - 1
    two_tc, bf16_act = _chip_traits()
    tile_b = _select_tile_b(B, tile_b, two_tc)

    xt = x.T.astype(jnp.float32)                       # feature-major: (in_dim, B)
    Bp = _round_up(B, tile_b)
    if Bp != B:
        xt = jnp.pad(xt, ((0, 0), (0, Bp - B)))

    flat_params = [a for wb in params for a in wb]
    probs_fb = pl.pallas_call(
        _make_probs_kernel(num_hidden, in_dim, bf16_act),
        out_shape=jax.ShapeDtypeStruct((1, Bp), jnp.float32),
        grid_spec=pltpu.PrefetchScalarGridSpec(
            num_scalar_prefetch=0,
            grid=(Bp // tile_b,),
            in_specs=_specs(in_dim, tile_b, flat_params),
            out_specs=pl.BlockSpec((1, tile_b), lambda i: (0, i)),
        ),
        compiler_params=pltpu.CompilerParams(
            dimension_semantics=("parallel",)),
    )(xt, *flat_params)

    return probs_fb[0, :B].reshape(B, 1)


def pcm_bce_fused(train, params, n_pos, *, tile_b=None):
    """Fused Prob_Net forward + BCE loss.  train: (B, in_dim); rows < n_pos have label 1."""
    B, in_dim = train.shape
    num_hidden = len(params) - 1
    two_tc, bf16_act = _chip_traits()
    tile_b = _select_tile_b(B, tile_b, two_tc)

    xt = train.T.astype(jnp.float32)
    Bp = _round_up(B, tile_b)
    if Bp != B:
        xt = jnp.pad(xt, ((0, 0), (0, Bp - B)))
    n_tiles = Bp // tile_b

    flat_params = [a for wb in params for a in wb]
    partials = pl.pallas_call(
        _make_bce_kernel(num_hidden, in_dim, bf16_act, tile_b, n_pos, B),
        out_shape=jax.ShapeDtypeStruct((1, n_tiles * 128), jnp.float32),
        grid_spec=pltpu.PrefetchScalarGridSpec(
            num_scalar_prefetch=0,
            grid=(n_tiles,),
            in_specs=_specs(in_dim, tile_b, flat_params),
            out_specs=pl.BlockSpec((1, 128), lambda i: (0, i)),
        ),
        compiler_params=pltpu.CompilerParams(
            dimension_semantics=("parallel",)),
    )(xt, *flat_params)

    return jnp.sum(partials.reshape(n_tiles, 128)[:, 0]) / B


def prob_net_forward_ref(x, params):
    """Pure-JAX f32 reference (same stored params, full-precision activations)."""
    h = x.T.astype(jnp.float32)
    for (w, b) in params[:-1]:
        h = _elu(jnp.asarray(w, jnp.float32) @ h + b)
    w_out_col, b_out = params[-1]                       # (Hp, 1), (1, 1)
    z = jnp.asarray(w_out_col, jnp.float32).T @ h + b_out
    return (1.0 / (1.0 + jnp.exp(-z))).T


# ---------------------------------------------------------------------------
# PCM forward (wrapper: resample, concat, loss)
# ---------------------------------------------------------------------------
def _pcm_train_data(x_samples, y_samples, key):
    sample_size = y_samples.shape[0]
    xy = jnp.concatenate([x_samples, y_samples], axis=1)
    kx, ky = jax.random.split(key)
    # resample(..., batch_size=N, replace=False) == a random row permutation
    x_ref_rows = x_samples[jax.random.permutation(kx, sample_size)]
    y_ref_rows = y_samples[jax.random.permutation(ky, sample_size)]
    data_margin = jnp.concatenate([x_ref_rows, y_ref_rows], axis=1)
    train = jnp.concatenate([xy, data_margin], axis=0)             # (2N, in_dim)
    labels = jnp.concatenate(
        [jnp.ones((sample_size, 1), jnp.float32),
         jnp.zeros((sample_size, 1), jnp.float32)], axis=0)
    return train, labels


def _bce_loss(probs, labels):
    # torch.nn.BCELoss clamps log terms at -100
    logp = jnp.maximum(jnp.log(probs), -100.0)
    log1mp = jnp.maximum(jnp.log(1.0 - probs), -100.0)
    return -jnp.mean(labels * logp + (1.0 - labels) * log1mp)


def pcm_forward(params, x_samples, y_samples, key, *, tile_b=None):
    train, _ = _pcm_train_data(x_samples, y_samples, key)
    # Fused kernel: labels are implied by row index (first N rows -> label 1).
    return pcm_bce_fused(train, params, x_samples.shape[0], tile_b=tile_b)


def pcm_forward_ref(params, x_samples, y_samples, key):
    train, labels = _pcm_train_data(x_samples, y_samples, key)
    probs = prob_net_forward_ref(train, params)
    return _bce_loss(probs, labels)


# ---------------------------------------------------------------------------
# Parameter init (PyTorch: weight ~ N(0, sigma), bias = 0), padded H=100 -> 128
# ---------------------------------------------------------------------------
def init_pcm_params(key, x_dim, y_dim, hidden_layers, hidden_width=100,
                    sigma=0.02, pad_to=128):
    in_dim = x_dim + y_dim
    Hp = _round_up(hidden_width, pad_to)
    params = []

    # layer 0: in_dim -> hidden ; f32 (used on the VPU), rows padded with zeros
    key, k = jax.random.split(key)
    w0 = jnp.zeros((Hp, in_dim), jnp.float32).at[:hidden_width, :].set(
        sigma * jax.random.normal(k, (hidden_width, in_dim), jnp.float32))
    params.append((w0, jnp.zeros((Hp, 1), jnp.float32)))

    # hidden -> hidden layers: bf16 weights (MXU operands, half the DMA)
    for _ in range(hidden_layers - 1):
        key, k = jax.random.split(key)
        w = jnp.zeros((Hp, Hp), jnp.float32).at[:hidden_width, :hidden_width].set(
            sigma * jax.random.normal(k, (hidden_width, hidden_width), jnp.float32))
        params.append((w.astype(jnp.bfloat16), jnp.zeros((Hp, 1), jnp.float32)))

    # output layer: hidden -> 1, stored as an (Hp, 1) f32 COLUMN (VPU+XLU path)
    key, k = jax.random.split(key)
    w_out = jnp.zeros((Hp, 1), jnp.float32).at[:hidden_width, 0].set(
        sigma * jax.random.normal(k, (hidden_width,), jnp.float32))
    params.append((w_out, jnp.zeros((1, 1), jnp.float32)))
    return tuple(params)


if __name__ == "__main__":
    key = jax.random.PRNGKey(0)
    pkey, xkey, ykey, rkey = jax.random.split(key, 4)

    # PCM(x_dim=1, y_dim=1, hidden_size=2) -> Prob_Net(in=2, hidden_layers=2, width=100)
    X_DIM, Y_DIM, PCM_HIDDEN_SIZE_ARG = 1, 1, 2
    SAMPLE_SIZE = 128          # -> 256 training rows

    params = init_pcm_params(pkey, X_DIM, Y_DIM, hidden_layers=PCM_HIDDEN_SIZE_ARG)
    x_samples = jax.random.normal(xkey, (SAMPLE_SIZE, X_DIM), jnp.float32)
    y_samples = jax.random.normal(ykey, (SAMPLE_SIZE, Y_DIM), jnp.float32)

    loss = pcm_forward(params, x_samples, y_samples, rkey)
    loss = jax.block_until_ready(loss)

    # correctness vs. full-f32 reference (relaxed tol for bf16 operands/activations)
    loss_ref = pcm_forward_ref(params, x_samples, y_samples, rkey)
    train, _ = _pcm_train_data(x_samples, y_samples, rkey)
    probs = jax.block_until_ready(prob_net_forward(train, params))
    probs_ref = prob_net_forward_ref(train, params)

    assert loss.shape == ()
    assert bool(jnp.isfinite(loss))
    assert float(jnp.max(jnp.abs(probs - probs_ref))) < 5e-3, "prob mismatch vs reference"
    assert jnp.allclose(loss, loss_ref, atol=5e-3, rtol=5e-3), (float(loss), float(loss_ref))

    print("KERNEL_OK")
</pallas_src>

<mosaic_0001>
module attributes {stable_mosaic.version = 11 : i64} {
  func.func @kernel(%arg0: i32, %arg1: memref<2x256xf32, #tpu.memory_space<vmem>>, %arg2: memref<128x2xf32, #tpu.memory_space<vmem>>, %arg3: memref<128x1xf32, #tpu.memory_space<vmem>>, %arg4: memref<128x128xbf16, #tpu.memory_space<vmem>>, %arg5: memref<128x1xf32, #tpu.memory_space<vmem>>, %arg6: memref<128x1xf32, #tpu.memory_space<vmem>>, %arg7: memref<1x1xf32, #tpu.memory_space<vmem>>, %arg8: memref<1x128xf32, #tpu.memory_space<vmem>>) attributes {dimension_semantics = [#tpu.dimension_semantics<parallel>], iteration_bounds = array<i64: 1>, scalar_prefetch = 0 : i64, scratch_operands = 0 : i64, tpu.core_type = #tpu.core_type<tc>, window_params = [{transform_indices = @transform_0, window_bounds = array<i64: 2, 256>}, {pipeline_mode = #tpu.pipeline_mode<synchronous>, transform_indices = @transform_1, window_bounds = array<i64: 128, 2>}, {pipeline_mode = #tpu.pipeline_mode<synchronous>, transform_indices = @transform_2, window_bounds = array<i64: 128, 1>}, {pipeline_mode = #tpu.pipeline_mode<synchronous>, transform_indices = @transform_3, window_bounds = array<i64: 128, 128>}, {pipeline_mode = #tpu.pipeline_mode<synchronous>, transform_indices = @transform_4, window_bounds = array<i64: 128, 1>}, {pipeline_mode = #tpu.pipeline_mode<synchronous>, transform_indices = @transform_5, window_bounds = array<i64: 128, 1>}, {pipeline_mode = #tpu.pipeline_mode<synchronous>, transform_indices = @transform_6, window_bounds = array<i64: 1, 1>}, {transform_indices = @transform_7, window_bounds = array<i64: 1, 128>}]} {
    %c0 = arith.constant 0 : index
    %c0_0 = arith.constant 0 : index
    %0 = vector.load %arg1[%c0, %c0_0] : memref<2x256xf32, #tpu.memory_space<vmem>>, vector<2x256xf32>
    %c0_1 = arith.constant 0 : index
    %c0_2 = arith.constant 0 : index
    %1 = vector.load %arg2[%c0_1, %c0_2] : memref<128x2xf32, #tpu.memory_space<vmem>>, vector<128x2xf32>
    %c0_3 = arith.constant 0 : index
    %c0_4 = arith.constant 0 : index
    %2 = vector.load %arg3[%c0_3, %c0_4] : memref<128x1xf32, #tpu.memory_space<vmem>>, vector<128x1xf32>
    %3 = vector.extract_strided_slice %1 {offsets = [0, 0], sizes = [128, 1], strides = [1, 1]} : vector<128x2xf32> to vector<128x1xf32>
    %4 = vector.extract_strided_slice %0 {offsets = [0, 0], sizes = [1, 256], strides = [1, 1]} : vector<2x256xf32> to vector<1x256xf32>
    %5 = vector.broadcast %3 : vector<128x1xf32> to vector<128x256xf32>
    %6 = vector.broadcast %4 : vector<1x256xf32> to vector<128x256xf32>
    %7 = arith.mulf %5, %6 : vector<128x256xf32>
    %8 = vector.broadcast %2 : vector<128x1xf32> to vector<128x256xf32>
    %9 = arith.addf %8, %7 : vector<128x256xf32>
    %10 = vector.extract_strided_slice %1 {offsets = [0, 1], sizes = [128, 1], strides = [1, 1]} : vector<128x2xf32> to vector<128x1xf32>
    %11 = vector.extract_strided_slice %0 {offsets = [1, 0], sizes = [1, 256], strides = [1, 1]} : vector<2x256xf32> to vector<1x256xf32>
    %12 = vector.broadcast %10 : vector<128x1xf32> to vector<128x256xf32>
    %13 = vector.broadcast %11 : vector<1x256xf32> to vector<128x256xf32>
    %14 = arith.mulf %12, %13 : vector<128x256xf32>
    %15 = arith.addf %9, %14 : vector<128x256xf32>
    %16 = arith.truncf %15 : vector<128x256xf32> to vector<128x256xbf16>
    %cst = arith.constant 0.000000e+00 : bf16
    %17 = vector.broadcast %cst : bf16 to vector<128x256xbf16>
    %18 = arith.cmpf ogt, %16, %17 : vector<128x256xbf16>
    %19 = math.exp %16 : vector<128x256xbf16>
    %cst_5 = arith.constant 1.000000e+00 : bf16
    %20 = vector.broadcast %cst_5 : bf16 to vector<128x256xbf16>
    %21 = arith.subf %19, %20 : vector<128x256xbf16>
    %22 = arith.select %18, %16, %21 : vector<128x256xi1>, vector<128x256xbf16>
    %c0_6 = arith.constant 0 : index
    %c0_7 = arith.constant 0 : index
    %23 = vector.load %arg4[%c0_6, %c0_7] : memref<128x128xbf16, #tpu.memory_space<vmem>>, vector<128x128xbf16>
    %cst_8 = arith.constant dense<0.000000e+00> : vector<128x256xf32>
    %24 = tpu.matmul %23, %22, %cst_8 {dimension_numbers = #tpu.dot_dimension_numbers<[1], [0], [0], [1], [0, 0, 1, 1], [], []>} : vector<128x128xbf16>, vector<128x256xbf16>, vector<128x256xf32> -> vector<128x256xf32>
    %c0_9 = arith.constant 0 : index
    %c0_10 = arith.constant 0 : index
    %25 = vector.load %arg5[%c0_9, %c0_10] : memref<128x1xf32, #tpu.memory_space<vmem>>, vector<128x1xf32>
    %26 = vector.broadcast %25 : vector<128x1xf32> to vector<128x256xf32>
    %27 = arith.addf %24, %26 : vector<128x256xf32>
    %28 = arith.truncf %27 : vector<128x256xf32> to vector<128x256xbf16>
    %cst_11 = arith.constant 0.000000e+00 : bf16
    %29 = vector.broadcast %cst_11 : bf16 to vector<128x256xbf16>
    %30 = arith.cmpf ogt, %28, %29 : vector<128x256xbf16>
    %31 = math.exp %28 : vector<128x256xbf16>
    %cst_12 = arith.constant 1.000000e+00 : bf16
    %32 = vector.broadcast %cst_12 : bf16 to vector<128x256xbf16>
    %33 = arith.subf %31, %32 : vector<128x256xbf16>
    %34 = arith.select %30, %28, %33 : vector<128x256xi1>, vector<128x256xbf16>
    %35 = arith.extf %34 : vector<128x256xbf16> to vector<128x256xf32>
    %c0_13 = arith.constant 0 : index
    %c0_14 = arith.constant 0 : index
    %36 = vector.load %arg6[%c0_13, %c0_14] : memref<128x1xf32, #tpu.memory_space<vmem>>, vector<128x1xf32>
    %37 = vector.broadcast %36 : vector<128x1xf32> to vector<128x256xf32>
    %38 = arith.mulf %35, %37 : vector<128x256xf32>
    %cst_15 = arith.constant dense<0.000000e+00> : vector<256xf32>
    %39 = vector.multi_reduction <add>, %38, %cst_15 [0] : vector<128x256xf32> to vector<256xf32>
    %40 = vector.shape_cast %39 : vector<256xf32> to vector<1x256xf32>
    %c0_16 = arith.constant 0 : index
    %c0_17 = arith.constant 0 : index
    %41 = vector.load %arg7[%c0_16, %c0_17] : memref<1x1xf32, #tpu.memory_space<vmem>>, vector<1x1xf32>
    %42 = vector.broadcast %41 : vector<1x1xf32> to vector<1x256xf32>
    %43 = arith.addf %40, %42 : vector<1x256xf32>
    %c256_i32 = arith.constant 256 : i32
    %44 = arith.muli %arg0, %c256_i32 : i32
    %45 = tpu.iota {dimensions = array<i32: 1>} : vector<1x256xi32>
    %46 = vector.broadcast %44 : i32 to vector<1x256xi32>
    %47 = arith.addi %46, %45 : vector<1x256xi32>
    %cst_18 = arith.constant 0.000000e+00 : f32
    %48 = vector.broadcast %cst_18 : f32 to vector<1x256xf32>
    %49 = arith.subf %48, %43 : vector<1x256xf32>
    %cst_19 = arith.constant 0.000000e+00 : f32
    %50 = vector.broadcast %cst_19 : f32 to vector<1x256xf32>
    %51 = arith.maximumf %49, %50 : vector<1x256xf32>
    %52 = math.absf %43 : vector<1x256xf32>
    %cst_20 = arith.constant 0.000000e+00 : f32
    %53 = vector.broadcast %cst_20 : f32 to vector<1x256xf32>
    %54 = arith.subf %53, %52 : vector<1x256xf32>
    %55 = math.exp %54 : vector<1x256xf32>
    %cst_21 = arith.constant 1.000000e+00 : f32
    %56 = vector.broadcast %cst_21 : f32 to vector<1x256xf32>
    %57 = arith.addf %56, %55 : vector<1x256xf32>
    %58 = math.log %57 : vector<1x256xf32>
    %59 = arith.addf %51, %58 : vector<1x256xf32>
    %60 = arith.addf %59, %43 : vector<1x256xf32>
    %c128_i32 = arith.constant 128 : i32
    %61 = vector.broadcast %c128_i32 : i32 to vector<1x256xi32>
    %62 = arith.cmpi slt, %47, %61 : vector<1x256xi32>
    %63 = arith.select %62, %59, %60 : vector<1x256xi1>, vector<1x256xf32>
    %cst_22 = arith.constant 1.000000e+02 : f32
    %64 = vector.broadcast %cst_22 : f32 to vector<1x256xf32>
    %65 = arith.minimumf %63, %64 : vector<1x256xf32>
    %c256_i32_23 = arith.constant 256 : i32
    %66 = vector.broadcast %c256_i32_23 : i32 to vector<1x256xi32>
    %67 = arith.cmpi slt, %47, %66 : vector<1x256xi32>
    %cst_24 = arith.constant 0.000000e+00 : f32
    %68 = vector.broadcast %cst_24 : f32 to vector<1x256xf32>
    %69 = arith.select %67, %65, %68 : vector<1x256xi1>, vector<1x256xf32>
    %cst_25 = arith.constant dense<0.000000e+00> : vector<1xf32>
    %70 = vector.multi_reduction <add>, %69, %cst_25 [1] : vector<1x256xf32> to vector<1xf32>
    %71 = vector.shape_cast %70 : vector<1xf32> to vector<1x1xf32>
    %72 = vector.shape_cast %71 : vector<1x1xf32> to vector<1x1xf32>
    %73 = vector.broadcast %72 : vector<1x1xf32> to vector<1x128xf32>
    %c0_26 = arith.constant 0 : index
    %c0_27 = arith.constant 0 : index
    %74 = vector.load %arg8[%c0_26, %c0_27] : memref<1x128xf32, #tpu.memory_space<vmem>>, vector<1x128xf32>
    tpu.vector_store %arg8[%c0_26, %c0_27], %73 {strides = array<i32>} : memref<1x128xf32, #tpu.memory_space<vmem>>, vector<1x128xf32>,
    return
  }
  func.func @transform_0(%arg0: i32) -> (i32, i32) {
    %c0_i32 = arith.constant 0 : i32
    %c0_i32_0 = arith.constant 0 : i32
    return %c0_i32, %arg0 : i32, i32
  }
  func.func @transform_1(%arg0: i32) -> (i32, i32) {
    %c0_i32 = arith.constant 0 : i32
    %c0_i32_0 = arith.constant 0 : i32
    %c0_i32_1 = arith.constant 0 : i32
    return %c0_i32, %c0_i32_0 : i32, i32
  }
  func.func @transform_2(%arg0: i32) -> (i32, i32) {
    %c0_i32 = arith.constant 0 : i32
    %c0_i32_0 = arith.constant 0 : i32
    %c0_i32_1 = arith.constant 0 : i32
    return %c0_i32, %c0_i32_0 : i32, i32
  }
  func.func @transform_3(%arg0: i32) -> (i32, i32) {
    %c0_i32 = arith.constant 0 : i32
    %c0_i32_0 = arith.constant 0 : i32
    %c0_i32_1 = arith.constant 0 : i32
    return %c0_i32, %c0_i32_0 : i32, i32
  }
  func.func @transform_4(%arg0: i32) -> (i32, i32) {
    %c0_i32 = arith.constant 0 : i32
    %c0_i32_0 = arith.constant 0 : i32
    %c0_i32_1 = arith.constant 0 : i32
    return %c0_i32, %c0_i32_0 : i32, i32
  }
  func.func @transform_5(%arg0: i32) -> (i32, i32) {
    %c0_i32 = arith.constant 0 : i32
    %c0_i32_0 = arith.constant 0 : i32
    %c0_i32_1 = arith.constant 0 : i32
    return %c0_i32, %c0_i32_0 : i32, i32
  }
  func.func @transform_6(%arg0: i32) -> (i32, i32) {
    %c0_i32 = arith.constant 0 : i32
    %c0_i32_0 = arith.constant 0 : i32
    %c0_i32_1 = arith.constant 0 : i32
    return %c0_i32, %c0_i32_0 : i32, i32
  }
  func.func @transform_7(%arg0: i32) -> (i32, i32) {
    %c0_i32 = arith.constant 0 : i32
    %c0_i32_0 = arith.constant 0 : i32
    return %c0_i32, %arg0 : i32, i32
  }
}

</mosaic_0001>

<bundles_post_ra>
// kernel: tpu_custom_call.1
= control target key start
LH: loop header
LB: loop body
LE: loop exit
PB: predicated region body
PF: predicated region fallthrough
CT: control target
= control target key end

     0   :  { %s3313_s0 = inlined_call_operand.vmem [shape: f32[2,256], index: 0, kind: input, shape index: {}]   ;;  %s3314_s1 = inlined_call_operand.vmem [shape: f32[128,2], index: 1, kind: input, shape index: {}]   ;;  %s3315_s2 = inlined_call_operand.vmem [shape: f32[128,1], index: 2, kind: input, shape index: {}]   ;;  %s3316_s3 = inlined_call_operand.vmem [shape: bf16[128,128], index: 3, kind: input, shape index: {}]   ;;  %s3317_s4 = inlined_call_operand.vmem [shape: f32[128,1], index: 4, kind: input, shape index: {}]   ;;  %s3318_s5 = inlined_call_operand.vmem [shape: f32[128,1], index: 5, kind: input, shape index: {}]   ;;  %s3319_s6 = inlined_call_operand.<no memory space> [shape: f32[1,1], index: 6, kind: input, shape index: {}]   ;;  %s3320_s7 = inlined_call_operand.hbm [shape: f32[1,128], index: 7, kind: output, shape index: {}]  }
   0x1   :  { %v12_v0 = vstv %s3319_s6 }
   0x2   :  { %13 = vst [vmem:[#allocation2] sm:$0x1] %v12_v0 }
   0x3   :  { %v1934_v1 = vld [vmem:[%s3314_s1 + $0x20] sm:$0xff]  ;;  %v1939_v2 = vld [vmem:[%s3314_s1 + $0x10] sm:$0xff]  ;;  %v1885_v4 = vmov 0  }
   0x4   :  { %v1944_v3 = vld [vmem:[%s3314_s1] sm:$0xff]  ;;  %1704 = vset.pattern.permute.xlu2 %v1885_v4  ;;  %1703 = vset.pattern.permute.xlu1 %v1885_v4 }
   0x5   :  { %1702 = vset.pattern.permute.xlu0 %v1885_v4  ;;  %84 = vperm.xlu2 %1704, %v1934_v1  }
   0x6   :  { %74 = vperm.xlu1 %1703, %v1939_v2   ;;  %64 = vperm.xlu0 %1702, %v1944_v3  }
   0x7   :  { %14 = vsyncpa [#allocation4], 0  ;;  %v35_v5 = vld [vmem:[%s3314_s1 + $0x28] sm:$0xff]  ;;  %v1958_v6 = vld [vmem:[%s3314_s1 + $0x18] sm:$0xff]  ;;  %v1886_v22 = vmov 1  }
   0x8   :  { %v1963_v7 = vld [vmem:[%s3314_s1 + $0x8] sm:$0xff]  ;;  %v38_v8 = vld [vmem:[%s3314_s1 + $0x40] sm:$0xff]  ;;  %v1973_v9 = vld [vmem:[%s3314_s1 + $0x38] sm:$0xff] }
   0x9   :  { %v36_v10 = vld [vmem:[%s3314_s1 + $0x30] sm:$0xff]  ;;  %v41_v11 = vld [vmem:[%s3314_s1 + $0x58] sm:$0xff]  ;;  %v39_v13 = vld [vmem:[%s3314_s1 + $0x48] sm:$0xff] }
   0xa   :  { %v40_v12 = vld [vmem:[%s3314_s1 + $0x50] sm:$0xff]  ;;  %v43_v15 = vld [vmem:[%s3314_s1 + $0x68] sm:$0xff]  ;;  %v42_v16 = vld [vmem:[%s3314_s1 + $0x60] sm:$0xff] }
   0xb   :  { %v44_v14 = vld [vmem:[%s3314_s1 + $0x70] sm:$0xff]  ;;  %v61_v17 = vld [vmem:[%s3315_s2 + $0x78] sm:$0xff]  ;;  %v58_v20 = vld [vmem:[%s3315_s2 + $0x60] sm:$0xff] }
   0xc   :  { %v60_v18 = vld [vmem:[%s3315_s2 + $0x70] sm:$0xff]  ;;  %v45_v19 = vld [vmem:[%s3314_s1 + $0x78] sm:$0xff]  ;;  %v55_v21 = vld [vmem:[%s3315_s2 + $0x48] sm:$0xff]  ;;  %s1570_s1 = sshll.u32 %s3320_s7, 4  ;;  %s1571_s1 = int_to_ptr.hbm [resolvable:$true] %s1570_s1 }
   0xd   :  { %89 = vperm.xlu2 %1704, %v35_v5   ;;  %v59_v23 = vld [vmem:[%s3315_s2 + $0x68] sm:$0xff]  ;;  %v57_v24 = vld [vmem:[%s3315_s2 + $0x58] sm:$0xff]  ;;  %v56_v25 = vld [vmem:[%s3315_s2 + $0x50] sm:$0xff] }
   0xe   :  { %79 = vperm.xlu1 %1703, %v1958_v6   ;;  %69 = vperm.xlu0 %1702, %v1963_v7   ;;  %v54_v26 = vld [vmem:[%s3315_s2 + $0x40] sm:$0xff]  ;;  %v53_v27 = vld [vmem:[%s3315_s2 + $0x38] sm:$0xff]  ;;  %v52_v29 = vld [vmem:[%s3315_s2 + $0x30] sm:$0xff] }
   0xf   :  { %v50_v30 = vld [vmem:[%s3315_s2 + $0x20] sm:$0xff]  ;;  %v47_v32 = vld [vmem:[%s3315_s2 + $0x8] sm:$0xff]  ;;  %v717_v35 = vld [vmem:[%s3317_s4 + $0x10] sm:$0xff] }
  0x10   :  { %v51_v34 = vld [vmem:[%s3315_s2 + $0x28] sm:$0xff]  ;;  %v49_v39 = vld [vmem:[%s3315_s2 + $0x18] sm:$0xff]  ;;  %v48_v40 = vld [vmem:[%s3315_s2 + $0x10] sm:$0xff] }
  0x11   :  { %v720_v41 = vld [vmem:[%s3317_s4 + $0x28] sm:$0xff]  ;;  %v46_v45 = vld [vmem:[%s3315_s2] sm:$0xff]  ;;  %v726_v50 = vld [vmem:[%s3317_s4 + $0x58] sm:$0xff] }
  0x12   :  { %v723_v46 = vld [vmem:[%s3317_s4 + $0x40] sm:$0xff]  ;;  %v729_v59 = vld [vmem:[%s3317_s4 + $0x70] sm:$0xff] }
  0x13   :  { %v29_v51 = vld [vmem:[%s3313_s0] sm:$0xf] }
  0x14   :  { %v357_v55 = vperm.slane %v29_v51, 1  ;;  %v358_v56 = vperm.slane %v29_v51, 3  ;;  %v143_v57 = vperm.slane %v29_v51, 0  ;;  %v144_v58 = vperm.slane %v29_v51, 2 }
  0x15   :  { %104 = vperm.xlu2 %1704, %v38_v8  }
  0x16   :  { %99 = vperm.xlu1 %1703, %v1973_v9   ;;  %94 = vperm.xlu0 %1702, %v36_v10   ;;  %v2116_v60 = vperm.slane %v357_v55, 1  ;;  %v2118_v61 = vperm.slane %v358_v56, 1  ;;  %v2120_v62 = vperm.slane %v143_v57, 0  ;;  %v2122_v63 = vperm.slane %v144_v58, 0 }
  0x1d   :  { %119 = vperm.xlu2 %1704, %v41_v11  }
  0x1e   :  { %114 = vperm.xlu1 %1703, %v40_v12   ;;  %109 = vperm.xlu0 %1702, %v39_v13  }
  0x25   :  { %134 = vperm.xlu2 %1704, %v44_v14  }
  0x26   :  { %129 = vperm.xlu1 %1703, %v43_v15   ;;  %124 = vperm.xlu0 %1702, %v42_v16  }
  0x2d   :  { %258 = vperm.xlu2 %1704, %v61_v17   ;;  %v1345_v17 = vld [vmem:[%s3318_s5 + $0x20] sm:$0xff] }
  0x2e   :  { %253 = vperm.xlu1 %1703, %v60_v18   ;;  %139 = vperm.xlu0 %1702, %v45_v19  }
  0x35   :  { %243 = vperm.xlu2 %1704, %v58_v20  }
  0x36   :  { %1705 = vset.pattern.permute.xlu1 %v1886_v22  ;;  %228 = vperm.xlu0 %1702, %v55_v21  }
  0x37   :  { %354 = vperm.xlu1 %1705, %v45_v19  }
  0x3d   :  { %1707 = vset.pattern.permute.xlu2 %v1886_v22 }
  0x3e   :  { %1710 = vset.pattern.permute.xlu0 %v1886_v22  ;;  %342 = vperm.xlu2 %1707, %v42_v16  }
  0x3f   :  { %1706 = vset.pattern.permute.xlu1 %v1885_v4  ;;  %350 = vperm.xlu0 %1710, %v44_v14  }
  0x40   :  { %248 = vperm.xlu1 %1706, %v59_v23  }
  0x46   :  { %1708 = vset.pattern.permute.xlu2 %v1885_v4 }
  0x47   :  { %346 = vperm.xlu0 %1710, %v43_v15   ;;  %238 = vperm.xlu2 %1708, %v57_v24  }
  0x48   :  { %233 = vperm.xlu1 %1706, %v56_v25  }
  0x4f   :  { %334 = vperm.xlu0 %1710, %v40_v12   ;;  %223 = vperm.xlu2 %1708, %v54_v26  }
  0x50   :  { %1709 = vset.pattern.permute.xlu1 %v1886_v22 }
  0x51   :  { %338 = vperm.xlu1 %1709, %v41_v11   ;;  %v730_v11 = vld [vmem:[%s3317_s4 + $0x78] sm:$0xff] }
  0x57   :  { %318 = vperm.xlu0 %1710, %v36_v10   ;;  %1711 = vset.pattern.permute.xlu2 %v1886_v22 }
  0x58   :  { %330 = vperm.xlu2 %1711, %v39_v13  }
  0x59   :  { %326 = vperm.xlu1 %1709, %v38_v8  }
  0x5f   :  { %314 = vperm.xlu0 %1710, %v35_v5   ;;  %v2034_v28 = vpop.permute.xlu2 %84 }
  0x60   :  { %1713 = vset.pattern.permute.xlu2 %v1885_v4 }
  0x61   :  { %1712 = vset.pattern.permute.xlu1 %v1885_v4  ;;  %218 = vperm.xlu2 %1713, %v53_v27  }
  0x62   :  { %213 = vperm.xlu1 %1712, %v52_v29  }
  0x67   :  { %302 = vperm.xlu0 %1710, %v1939_v2   ;;  %v2045_v31 = vpop.permute.xlu2 %89 }
  0x69   :  { %203 = vperm.xlu2 %1713, %v50_v30  }
  0x6a   :  { %1714 = vset.pattern.permute.xlu1 %v1886_v22 }
  0x6b   :  { %322 = vperm.xlu1 %1714, %v1973_v9  }
  0x6f   :  { %1719 = vset.pattern.permute.xlu0 %v1885_v4  ;;  %v2053_v33 = vpop.permute.xlu2 %104 }
  0x70   :  { %188 = vperm.xlu0 %1719, %v47_v32  }
  0x71   :  { %1716 = vset.pattern.permute.xlu2 %v1886_v22 }
  0x72   :  { %310 = vperm.xlu2 %1716, %v1934_v1  }
  0x73   :  { %1715 = vset.pattern.permute.xlu1 %v1885_v4 }
  0x74   :  { %208 = vperm.xlu1 %1715, %v51_v34  }
  0x77   :  { %v2064_v36 = vpop.permute.xlu2 %119 }
  0x78   :  { %v2066_v37 = vpop.permute.xlu1 %74  ;;  %743 = vperm.xlu0 %1719, %v717_v35   ;;  %v2068_v38 = vpop.permute.xlu0 %64  ;;  %v2154_v35 = vmul.f32 %v2120_v62, %v2034_v28  ;;  %v2187_v51 = vmul.f32 %v2122_v63, %v2064_v36 }
  0x79   :  { %v2201_v57 = vmul.f32 %v2122_v63, %v2066_v37  ;;  %v2209_v58 = vmul.f32 %v2122_v63, %v2068_v38 }
  0x7a   :  { %1717 = vset.pattern.permute.xlu2 %v1885_v4 }
  0x7b   :  { %198 = vperm.xlu2 %1717, %v49_v39   ;;  %v2158_v39 = vmul.f32 %v2122_v63, %v2034_v28  ;;  %v2179_v28 = vmul.f32 %v2122_v63, %v2053_v33 }
  0x7c   :  { %193 = vperm.xlu1 %1715, %v48_v40   ;;  %v2162_v40 = vmul.f32 %v2120_v62, %v2045_v31 }
  0x7f   :  { %v2080_v42 = vpop.permute.xlu2 %134 }
  0x80   :  { %v2082_v43 = vpop.permute.xlu1 %79  ;;  %758 = vperm.xlu0 %1719, %v720_v41   ;;  %v2084_v44 = vpop.permute.xlu0 %69  ;;  %v1348_v41 = vld [vmem:[%s3318_s5 + $0x38] sm:$0xff]  ;;  %v178_v55 = vmul.f32 %v2122_v63, %v2080_v42 }
  0x83   :  { %183 = vperm.xlu2 %1717, %v46_v45   ;;  %v2169_v45 = vmul.f32 %v2122_v63, %v2045_v31  ;;  %v2191_v31 = vmul.f32 %v2120_v62, %v2066_v37 }
  0x84   :  { %1718 = vset.pattern.permute.xlu1 %v1886_v22 }
  0x85   :  { %306 = vperm.xlu1 %1718, %v1958_v6  }
  0x87   :  { %v259_v47 = vpop.permute.xlu2 %258 }
  0x88   :  { %v2094_v48 = vpop.permute.xlu1 %99  ;;  %773 = vperm.xlu0 %1719, %v723_v46   ;;  %v2096_v49 = vpop.permute.xlu0 %94  ;;  %v2173_v46 = vmul.f32 %v2120_v62, %v2053_v33 }
  0x8b   :  { %1720 = vset.pattern.permute.xlu2 %v1886_v22 }
  0x8c   :  { %298 = vperm.xlu2 %1720, %v1963_v7  }
  0x8d   :  { %294 = vperm.xlu1 %1718, %v1944_v3  }
  0x8f   :  { %v244_v54 = vpop.permute.xlu2 %243 }
  0x90   :  { %v2107_v52 = vpop.permute.xlu1 %114  ;;  %788 = vperm.xlu0 %1719, %v726_v50   ;;  %v2109_v53 = vpop.permute.xlu0 %109  ;;  %v2183_v50 = vmul.f32 %v2120_v62, %v2064_v36  ;;  %v2205_v36 = vmul.f32 %v2120_v62, %v2068_v38  ;;  %v2223_v38 = vmul.f32 %v2120_v62, %v2084_v44 }
  0x94   :  { %1722 = vset.pattern.permute.xlu2 %v1885_v4 }
  0x95   :  { %1721 = vset.pattern.permute.xlu1 %v1885_v4 }
  0x98   :  { %v2124_v0 = vpop.permute.xlu1 %129  ;;  %803 = vperm.xlu0 %1719, %v729_v59   ;;  %v125_v1 = vpop.permute.xlu0 %124 }
  0x99   :  { %v173_v2 = vmul.f32 %v2120_v62, %v125_v1  ;;  %v174_v3 = vmul.f32 %v2122_v63, %v125_v1  ;;  %v343_v5 = vpop.permute.xlu2 %342 }
  0x9a   :  { %v387_v6 = vmul.f32 %v2116_v60, %v343_v5  ;;  %v388_v4 = vmul.f32 %v2118_v61, %v343_v5 }
  0x9b   :  { %v285_v7 = vadd.f32 %v244_v54, %v173_v2  ;;  %v286_v8 = vadd.f32 %v244_v54, %v174_v3  ;;  %v177_v54 = vmul.f32 %v2120_v62, %v2080_v42  ;;  %v2213_v42 = vmul.f32 %v2120_v62, %v2082_v43 }
  0x9d   :  { %v419_v9 = vadd.f32 %v387_v6, %v285_v7  ;;  %v420_v10 = vadd.f32 %v388_v4, %v286_v8  ;;  %v2219_v7 = vmul.f32 %v2122_v63, %v2082_v43  ;;  %v2227_v8 = vmul.f32 %v2122_v63, %v2084_v44 }
  0x9e   :  { %v168_v44 = vmul.f32 %v2122_v63, %v2109_v53 }
  0x9f   :  { %v2133_v14 = vpack.c.bf16 %v420_v10, %v419_v9  ;;  %v2231_v9 = vmul.f32 %v2120_v62, %v2094_v48 }
  0xa0   :  { %v254_v12 = vpop.permute.xlu1 %253  ;;  %808 = vperm.xlu0 %1719, %v730_v11   ;;  %v140_v13 = vpop.permute.xlu0 %139 }
  0xa1   :  { %v2135_v15 = vpop.permute.xlu2 %238  ;;  %v179_v16 = vmul.f32 %v2120_v62, %v140_v13  ;;  %v467_v18 = vunpack.c.l.bf16 %v2133_v14  ;;  %v180_v19 = vmul.f32 %v2122_v63, %v140_v13  ;;  %v468_v20 = vunpack.c.h.bf16 %v2133_v14 }
  0xa2   :  { %v289_v1 = vadd.f32 %v254_v12, %v177_v54  ;;  %v290_v2 = vadd.f32 %v254_v12, %v178_v55 }
  0xa3   :  { %v291_v22 = vadd.f32 %v259_v47, %v179_v16  ;;  %v555_v25 = vmul.f32 1.442695, %v467_v18  ;;  %v292_v26 = vadd.f32 %v259_v47, %v180_v19  ;;  %v557_v30 = vmul.f32 1.442695, %v468_v20 }
  0xa4   :  { %v167_v16 = vmul.f32 %v2120_v62, %v2109_v53  ;;  %vm2289_vm0 = vcmp.gt.f32.partialorder %v467_v18, 0.0  ;;  %vm2297_vm1 = vcmp.gt.f32.partialorder %v468_v20, 0.0 }
  0xa5   :  { %1723 = vpow2.f32 %v555_v25  ;;  %v2252_v25 = vmul.f32 %v2120_v62, %v2096_v49  ;;  %vm679_vm4 = vmpackc.low %vm2297_vm1, %vm2289_vm0 }
  0xa6   :  { %1725 = vpow2.f32 %v557_v30  ;;  %v175_v30 = vmul.f32 %v2120_v62, %v2124_v0 }
  0xa8   :  { %1379 = vperm.xlu0 %1719, %v1345_v17   ;;  %v229_v21 = vpop.permute.xlu0 %228 }
  0xa9   :  { %v355_v23 = vpop.permute.xlu1 %354  ;;  %v2144_v24 = vpop.permute.xlu2 %223  ;;  %v279_v53 = vadd.f32 %v229_v21, %v167_v16 }
  0xaa   :  { %v393_v27 = vmul.f32 %v2116_v60, %v355_v23  ;;  %v394_v29 = vmul.f32 %v2118_v61, %v355_v23  ;;  %v2248_v23 = vmul.f32 %v2122_v63, %v2094_v48  ;;  %v2307_v18 = vadd.f32 %v2144_v24, %v2179_v28 }
  0xab   :  { %v1724_v4 = vpop.eup %1723 }
  0xac   :  { %v425_v32 = vadd.f32 %v393_v27, %v291_v22  ;;  %v426_v34 = vadd.f32 %v394_v29, %v292_v26  ;;  %v1726_v10 = vpop.eup %1725  ;;  %v1351_v22 = vld [vmem:[%s3318_s5 + $0x50] sm:$0xff]  ;;  %v280_v27 = vadd.f32 %v229_v21, %v168_v44  ;;  %v169_v21 = vmul.f32 %v2120_v62, %v2107_v52 }
  0xad   :  { %v583_v29 = vpack.c.bf16 %v1726_v10, %v1724_v4  ;;  %v284_v44 = vadd.f32 %v2135_v15, %v2187_v51  ;;  %v2303_v51 = vadd.f32 %v2144_v24, %v2173_v46 }
  0xae   :  { %v2175_v47 = vpack.c.bf16 %v426_v34, %v425_v32  ;;  %v176_v32 = vmul.f32 %v2122_v63, %v2124_v0 }
  0xaf   :  { %v611_v10 = vunpack.c.l.bf16 %v583_v29  ;;  %v612_v62 = vunpack.c.h.bf16 %v583_v29 }
  0xb0   :  { %1394 = vperm.xlu0 %1719, %v1348_v41   ;;  %v473_v33 = vunpack.c.l.bf16 %v2175_v47  ;;  %v474_v56 = vunpack.c.h.bf16 %v2175_v47  ;;  %v2264_v41 = vmul.f32 %v2122_v63, %v2096_v49 }
  0xb1   :  { %v351_v59 = vpop.permute.xlu0 %350 }
  0xb2   :  { %v391_v3 = vmul.f32 %v2116_v60, %v351_v59  ;;  %v392_v37 = vmul.f32 %v2118_v61, %v351_v59  ;;  %v249_v5 = vpop.permute.xlu1 %248  ;;  %v331_v6 = vpop.permute.xlu2 %330  ;;  %v567_v13 = vmul.f32 1.442695, %v473_v33  ;;  %v569_v43 = vmul.f32 1.442695, %v474_v56 }
  0xb3   :  { %v381_v17 = vmul.f32 %v2116_v60, %v331_v6  ;;  %v382_v19 = vmul.f32 %v2118_v61, %v331_v6  ;;  %vm2313_vm2 = vcmp.gt.f32.partialorder %v473_v33, 0.0  ;;  %vm2327_vm3 = vcmp.gt.f32.partialorder %v474_v56, 0.0 }
  0xb4   :  { %v423_v11 = vadd.f32 %v391_v3, %v289_v1  ;;  %v424_v12 = vadd.f32 %v392_v37, %v290_v2  ;;  %1727 = vpow2.f32 %v567_v13  ;;  %v287_v1 = vadd.f32 %v249_v5, %v175_v30  ;;  %vm682_vm7 = vmpackc.low %vm2327_vm3, %vm2313_vm2 }
  0xb5   :  { %1729 = vpow2.f32 %v569_v43  ;;  %v413_v54 = vadd.f32 %v381_v17, %v279_v53  ;;  %v414_v55 = vadd.f32 %v382_v19, %v280_v27  ;;  %v288_v2 = vadd.f32 %v249_v5, %v176_v32  ;;  %v1354_v19 = vld [vmem:[%s3318_s5 + $0x68] sm:$0xff] }
  0xb6   :  { %v2254_v26 = vpack.c.bf16 %v424_v12, %v423_v11  ;;  %v170_v12 = vmul.f32 %v2122_v63, %v2107_v52  ;;  %v283_v5 = vadd.f32 %v2135_v15, %v2183_v50  ;;  %v1604_v53 = vadd.f32 -1.0, %v612_v62 }
  0xb7   :  { %v2282_v17 = vpack.c.bf16 %v414_v55, %v413_v54 }
  0xb8   :  { %1409 = vperm.xlu0 %1719, %v1351_v22   ;;  %v471_v48 = vunpack.c.l.bf16 %v2254_v26  ;;  %v472_v34 = vunpack.c.h.bf16 %v2254_v26  ;;  %v1603_v22 = vadd.f32 -1.0, %v611_v10 }
  0xb9   :  { %v347_v59 = vpop.permute.xlu0 %346  ;;  %v461_v24 = vunpack.c.l.bf16 %v2282_v17  ;;  %v462_v33 = vunpack.c.h.bf16 %v2282_v17 }
  0xba   :  { %v389_v3 = vmul.f32 %v2116_v60, %v347_v59  ;;  %v390_v0 = vmul.f32 %v2118_v61, %v347_v59  ;;  %v234_v37 = vpop.permute.xlu1 %233  ;;  %v563_v4 = vmul.f32 1.442695, %v471_v48  ;;  %v565_v49 = vmul.f32 1.442695, %v472_v34  ;;  %v1728_v11 = vpop.eup %1727 }
  0xbb   :  { %v2270_v6 = vpop.permute.xlu2 %218  ;;  %v1730_v16 = vpop.eup %1729  ;;  %v281_v32 = vadd.f32 %v234_v37, %v169_v21  ;;  %v282_v54 = vadd.f32 %v234_v37, %v170_v12  ;;  %vm2346_vm5 = vcmp.gt.f32.partialorder %v471_v48, 0.0  ;;  %v545_v52 = vmul.f32 1.442695, %v462_v33 }
  0xbc   :  { %v421_v13 = vadd.f32 %v389_v3, %v287_v1  ;;  %v422_v43 = vadd.f32 %v390_v0, %v288_v2  ;;  %1731 = vpow2.f32 %v563_v4  ;;  %v586_v50 = vpack.c.bf16 %v1730_v16, %v1728_v11 }
  0xbd   :  { %1733 = vpow2.f32 %v565_v49  ;;  %v663_v49 = vpack.c.bf16 %v1604_v53, %v1603_v22  ;;  %v543_v22 = vmul.f32 1.442695, %v461_v24  ;;  %v2355_v15 = vadd.f32 %v2270_v6, %v2231_v9 }
  0xbe   :  { %v2293_v63 = vpack.c.bf16 %v422_v43, %v421_v13  ;;  %v617_v27 = vunpack.c.l.bf16 %v586_v50  ;;  %v618_v29 = vunpack.c.h.bf16 %v586_v50  ;;  %v1511_v43 = vld [vmem:[#allocation2] sm:$0x1]  ;;  %vm2359_vm6 = vcmp.gt.f32.partialorder %v472_v34, 0.0 }
  0xbf   :  { %vm681_vm10 = vmpackc.low %vm2359_vm6, %vm2346_vm5  ;;  %vm2433_vm13 = vcmp.gt.f32.partialorder %v461_v24, 0.0  ;;  %vm2439_vm14 = vcmp.gt.f32.partialorder %v462_v33, 0.0 }
  0xc0   :  { %1424 = vperm.xlu0 %1719, %v1354_v19   ;;  %v469_v30 = vunpack.c.l.bf16 %v2293_v63  ;;  %v470_v20 = vunpack.c.h.bf16 %v2293_v63  ;;  %v1609_v1 = vadd.f32 -1.0, %v617_v27  ;;  %v1610_v2 = vadd.f32 -1.0, %v618_v29  ;;  %vm676_vm5 = vmpackc.low %vm2439_vm14, %vm2433_vm13 }
  0xc1   :  { %v335_v55 = vpop.permute.xlu0 %334 }
  0xc2   :  { %v383_v28 = vmul.f32 %v2116_v60, %v335_v55  ;;  %v384_v59 = vmul.f32 %v2118_v61, %v335_v55  ;;  %v1732_v3 = vpop.eup %1731  ;;  %v559_v21 = vmul.f32 1.442695, %v469_v30  ;;  %v561_v37 = vmul.f32 1.442695, %v470_v20 }
  0xc3   :  { %v339_v0 = vpop.permute.xlu1 %338  ;;  %v2320_v4 = vpop.permute.xlu2 %203  ;;  %v666_v50 = vpack.c.bf16 %v1610_v2, %v1609_v1  ;;  %v2369_v1 = vadd.f32 %v2270_v6, %v2248_v23  ;;  %vm2373_vm8 = vcmp.gt.f32.partialorder %v469_v30, 0.0  ;;  %vm2377_vm9 = vcmp.gt.f32.partialorder %v470_v20, 0.0 }
  0xc4   :  { %v1734_v10 = vpop.eup %1733  ;;  %v415_v62 = vadd.f32 %v383_v28, %v281_v32  ;;  %v416_v11 = vadd.f32 %v384_v59, %v282_v54  ;;  %v385_v12 = vmul.f32 %v2116_v60, %v339_v0  ;;  %v386_v13 = vmul.f32 %v2118_v61, %v339_v0  ;;  %vm680_vm11 = vmpackc.low %vm2377_vm9, %vm2373_vm8 }
  0xc5   :  { %v585_v19 = vpack.c.bf16 %v1734_v10, %v1732_v3  ;;  %1735 = vpow2.f32 %v559_v21  ;;  %v2340_v54 = vsel %vm679_vm4, %v2133_v14, %v663_v49  ;;  %v698_v9 = vsel %vm682_vm7, %v2175_v47, %v666_v50 }
  0xc6   :  { %v2333_v53 = vpack.c.bf16 %v416_v11, %v415_v62  ;;  %v417_v27 = vadd.f32 %v385_v12, %v283_v5  ;;  %v418_v29 = vadd.f32 %v386_v13, %v284_v44  ;;  %1737 = vpow2.f32 %v561_v37 }
  0xc7   :  { %v615_v32 = vunpack.c.l.bf16 %v585_v19  ;;  %v616_v56 = vunpack.c.h.bf16 %v585_v19  ;;  %v899_v2 = vunpack.c.l.b16 %v2340_v54  ;;  %1739 = vpow2.f32 %v543_v22 }
  0xc8   :  { %v2342_v55 = vpack.c.bf16 %v418_v29, %v417_v27  ;;  %1514 = vperm.xlu0 %1719, %v1511_v43   ;;  %v463_v44 = vunpack.c.l.bf16 %v2333_v53  ;;  %v464_v21 = vunpack.c.h.bf16 %v2333_v53  ;;  %1741 = vpow2.f32 %v545_v52 }
  0xc9   :  { %v319_v14 = vpop.permute.xlu0 %318  ;;  %v1607_v48 = vadd.f32 -1.0, %v615_v32  ;;  %v1608_v59 = vadd.f32 -1.0, %v616_v56  ;;  %v905_v62 = vunpack.c.l.b16 %v698_v9  ;;  %v906_v11 = vunpack.c.h.b16 %v698_v9 }
  0xca   :  { %v547_v23 = vmul.f32 1.442695, %v463_v44  ;;  %v465_v30 = vunpack.c.l.bf16 %v2342_v55  ;;  %v466_v12 = vunpack.c.h.bf16 %v2342_v55  ;;  %v549_v27 = vmul.f32 1.442695, %v464_v21 }
  0xcb   :  { %v327_v34 = vpop.permute.xlu1 %326  ;;  %v665_v3 = vpack.c.bf16 %v1608_v59, %v1607_v48  ;;  %v1736_v6 = vpop.eup %1735  ;;  %v269_v9 = vadd.f32 %v2320_v4, %v2154_v35  ;;  %v376_v35 = vmul.f32 %v2118_v61, %v319_v14  ;;  %vm2427_vm12 = vcmp.gt.f32.partialorder %v463_v44, 0.0  ;;  %v718_v44 = vld [vmem:[%s3317_s4 + $0x18] sm:$0xff] }
  0xcc   :  { %v379_v47 = vmul.f32 %v2116_v60, %v327_v34  ;;  %v380_v37 = vmul.f32 %v2118_v61, %v327_v34  ;;  %v311_v49 = vpop.permute.xlu2 %310  ;;  %v1738_v20 = vpop.eup %1737  ;;  %1743 = vpow2.f32 %v547_v23  ;;  %v551_v5 = vmul.f32 1.442695, %v465_v30 }
  0xcd   :  { %v697_v10 = vsel %vm681_vm10, %v2254_v26, %v665_v3  ;;  %v371_v50 = vmul.f32 %v2116_v60, %v311_v49  ;;  %v584_v22 = vpack.c.bf16 %v1738_v20, %v1736_v6  ;;  %v1740_v29 = vpop.eup %1739  ;;  %1745 = vpow2.f32 %v549_v27 }
  0xce   :  { %v411_v13 = vadd.f32 %v379_v47, %v2303_v51  ;;  %v412_v43 = vadd.f32 %v380_v37, %v2307_v18  ;;  %v903_v16 = vunpack.c.l.b16 %v697_v10  ;;  %v904_v19 = vunpack.c.h.b16 %v697_v10  ;;  %v715_v51 = vld [vmem:[%s3317_s4] sm:$0xff]  ;;  %v1742_v59 = vpop.eup %1741 }
  0xcf   :  { %v372_v18 = vmul.f32 %v2118_v61, %v311_v49  ;;  %v613_v28 = vunpack.c.l.bf16 %v584_v22  ;;  %v614_v48 = vunpack.c.h.bf16 %v584_v22  ;;  %733 = vperm.xlu1 %1721, %v715_v51   ;;  %v270_v34 = vadd.f32 %v2320_v4, %v2158_v39 }
  0xd0   :  { %v2398_v32 = vpack.c.bf16 %v412_v43, %v411_v13  ;;  %v921_v26 = vpack.c.b16 %v905_v62, %v903_v16  ;;  %v922_v56 = vpack.c.b16 %v906_v11, %v904_v19  ;;  %1747 = vpow2.f32 %v551_v5 }
  0xd1   :  { %v2404_v52 = vpop.permute.xlu0 %314  ;;  %v553_v3 = vmul.f32 1.442695, %v466_v12  ;;  %v1605_v23 = vadd.f32 -1.0, %v613_v28  ;;  %v1606_v6 = vadd.f32 -1.0, %v614_v48  ;;  %v375_v49 = vmul.f32 %v2116_v60, %v319_v14 }
  0xd2   :  { %939 = vmatpush.bf16.msra.mxu0 %v921_v26  ;;  %1683 = vmatpush.bf16.msra.mxu2 %v921_v26  ;;  %v459_v47 = vunpack.c.l.bf16 %v2398_v32  ;;  %v460_v37 = vunpack.c.h.bf16 %v2398_v32  ;;  %v900_v39 = vunpack.c.h.b16 %v2340_v54  ;;  %v1744_v4 = vpop.eup %1743  ;;  %v403_v10 = vadd.f32 %v371_v50, %v269_v9 }
  0xd3   :  { %988 = vmatpush.bf16.msra.mxu1 %v922_v56  ;;  %1691 = vmatpush.bf16.msra.mxu3 %v922_v56  ;;  %1749 = vpow2.f32 %v553_v3  ;;  %v404_v62 = vadd.f32 %v372_v18, %v270_v34  ;;  %v664_v13 = vpack.c.bf16 %v1606_v6, %v1605_v23  ;;  %v580_v43 = vpack.c.bf16 %v1742_v59, %v1740_v29  ;;  %v1746_v0 = vpop.eup %1745 }
  0xd4   :  { %v214_v20 = vpop.permute.xlu1 %213  ;;  %vm2451_vm15 = vcmp.gt.f32.partialorder %v464_v21, 0.0  ;;  %vm2455_vm0 = vcmp.gt.f32.partialorder %v465_v30, 0.0  ;;  %v541_v22 = vmul.f32 1.442695, %v460_v37  ;;  %v581_v56 = vpack.c.bf16 %v1746_v0, %v1744_v4 }
  0xd5   :  { %v2417_v11 = vpop.permute.xlu2 %198  ;;  %v273_v16 = vadd.f32 %v214_v20, %v2252_v25  ;;  %v274_v19 = vadd.f32 %v214_v20, %v2264_v41  ;;  %v539_v41 = vmul.f32 1.442695, %v459_v47  ;;  %v696_v46 = vsel %vm680_vm11, %v2293_v63, %v664_v13  ;;  %vm677_vm2 = vmpackc.low %vm2451_vm15, %vm2427_vm12 }
  0xd6   :  { %v1748_v27 = vpop.eup %1747  ;;  %v901_v29 = vunpack.c.l.b16 %v696_v46  ;;  %v902_v26 = vunpack.c.h.b16 %v696_v46  ;;  %v2461_v5 = vpack.c.bf16 %v404_v62, %v403_v10  ;;  %v605_v21 = vunpack.c.l.bf16 %v580_v43 }
  0xd7   :  { %1751 = vpow2.f32 %v539_v41  ;;  %v606_v51 = vunpack.c.h.bf16 %v580_v43  ;;  %748 = vperm.xlu1 %1721, %v718_v44   ;;  %v407_v18 = vadd.f32 %v375_v49, %v273_v16  ;;  %v408_v28 = vadd.f32 %v376_v35, %v274_v19  ;;  %v721_v16 = vld [vmem:[%s3317_s4 + $0x30] sm:$0xff] }
  0xd8   :  { %1753 = vpow2.f32 %v541_v22  ;;  %v919_v48 = vpack.c.b16 %v901_v29, %v899_v2  ;;  %v920_v59 = vpack.c.b16 %v902_v26, %v900_v39  ;;  %v607_v34 = vunpack.c.l.bf16 %v581_v56 }
  0xd9   :  { %v2463_v63 = vpop.permute.xlu0 %302  ;;  %v1750_v30 = vpop.eup %1749  ;;  %v608_v3 = vunpack.c.h.bf16 %v581_v56  ;;  %v1597_v23 = vadd.f32 -1.0, %v605_v21  ;;  %v2469_v6 = vmul.f32 %v2116_v60, %v2404_v52  ;;  %v2473_v20 = vmul.f32 %v2118_v61, %v2404_v52 }
  0xda   :  { %v582_v9 = vpack.c.bf16 %v1750_v30, %v1748_v27  ;;  %940 = vmatpush.bf16.msra.mxu0 %v919_v48  ;;  %1684 = vmatpush.bf16.msra.mxu2 %v919_v48  ;;  %vm2477_vm1 = vcmp.gt.f32.partialorder %v466_v12, 0.0  ;;  %v1598_v2 = vadd.f32 -1.0, %v606_v51  ;;  %v1599_v10 = vadd.f32 -1.0, %v607_v34 }
  0xdb   :  { %989 = vmatpush.bf16.msra.mxu1 %v920_v59  ;;  %1692 = vmatpush.bf16.msra.mxu3 %v920_v59  ;;  %v1600_v62 = vadd.f32 -1.0, %v608_v3  ;;  %v2483_v13 = vpack.c.bf16 %v408_v28, %v407_v18  ;;  %v451_v19 = vunpack.c.l.bf16 %v2461_v5  ;;  %v452_v56 = vunpack.c.h.bf16 %v2461_v5  ;;  %vm678_vm6 = vmpackc.low %vm2477_vm1, %vm2455_vm0 }
  0xdc   :  { %v609_v39 = vunpack.c.l.bf16 %v582_v9  ;;  %v610_v4 = vunpack.c.h.bf16 %v582_v9  ;;  %v660_v22 = vpack.c.bf16 %v1598_v2, %v1597_v23  ;;  %vm2501_vm3 = vcmp.gt.f32.partialorder %v459_v47, 0.0 }
  0xdd   :  { %v323_v49 = vpop.permute.xlu1 %322  ;;  %v2481_v35 = vpop.permute.xlu2 %183  ;;  %v661_v46 = vpack.c.bf16 %v1600_v62, %v1599_v10  ;;  %vm2507_vm4 = vcmp.gt.f32.partialorder %v460_v37, 0.0  ;;  %v455_v37 = vunpack.c.l.bf16 %v2483_v13  ;;  %v456_v14 = vunpack.c.h.bf16 %v2483_v13 }
  0xde   :  { %v1752_v52 = vpop.eup %1751  ;;  %v377_v43 = vmul.f32 %v2116_v60, %v323_v49  ;;  %v378_v12 = vmul.f32 %v2118_v61, %v323_v49  ;;  %v1601_v44 = vadd.f32 -1.0, %v609_v39  ;;  %v1602_v0 = vadd.f32 -1.0, %v610_v4  ;;  %vm675_vm7 = vmpackc.low %vm2507_vm4, %vm2501_vm3 }
  0xdf   :  { %v1754_v41 = vpop.eup %1753  ;;  %v693_v51 = vsel %vm677_vm2, %v2333_v53, %v661_v46  ;;  %763 = vperm.xlu1 %1721, %v721_v16   ;;  %v692_v25 = vsel %vm676_vm5, %v2282_v17, %v660_v22  ;;  %v533_v17 = vmul.f32 1.442695, %v456_v14  ;;  %vm2584_vm8 = vcmp.gt.f32.partialorder %v455_v37, 0.0 }
  0xe0   :  { %v409_v27 = vadd.f32 %v377_v43, %v2355_v15  ;;  %v410_v29 = vadd.f32 %v378_v12, %v2369_v1  ;;  %v579_v26 = vpack.c.bf16 %v1754_v41, %v1752_v52  ;;  %v662_v21 = vpack.c.bf16 %v1602_v0, %v1601_v44  ;;  %v724_v52 = vld [vmem:[%s3317_s4 + $0x48] sm:$0xff] }
  0xe1   :  { %v895_v50 = vunpack.c.l.b16 %v693_v51  ;;  %v896_v48 = vunpack.c.h.b16 %v693_v51  ;;  %v893_v16 = vunpack.c.l.b16 %v692_v25  ;;  %vm2591_vm9 = vcmp.gt.f32.partialorder %v456_v14, 0.0 }
  0xe2   :  { %v2515_v1 = vpack.c.bf16 %v410_v29, %v409_v27  ;;  %v189_v53 = vpop.permute.xlu0 %188  ;;  %v603_v47 = vunpack.c.l.bf16 %v579_v26  ;;  %v694_v24 = vsel %vm678_vm6, %v2342_v55, %v662_v21  ;;  %v604_v18 = vunpack.c.h.bf16 %v579_v26  ;;  %vm673_vm0 = vmpackc.low %vm2591_vm9, %vm2584_vm8 }
  0xe3   :  { %v897_v28 = vunpack.c.l.b16 %v694_v24  ;;  %v898_v59 = vunpack.c.h.b16 %v694_v24  ;;  %v263_v33 = vadd.f32 %v189_v53, %v2223_v38  ;;  %v531_v55 = vmul.f32 1.442695, %v455_v37 }
  0xe4   :  { %v1595_v9 = vadd.f32 -1.0, %v603_v47  ;;  %v1596_v34 = vadd.f32 -1.0, %v604_v18  ;;  %v457_v3 = vunpack.c.l.bf16 %v2515_v1  ;;  %v458_v23 = vunpack.c.h.bf16 %v2515_v1 }
  0xe5   :  { %v917_v54 = vpack.c.b16 %v897_v28, %v895_v50  ;;  %v918_v2 = vpack.c.b16 %v898_v59, %v896_v48  ;;  %v264_v43 = vadd.f32 %v189_v53, %v2227_v8  ;;  %1755 = vpow2.f32 %v531_v55  ;;  %v716_v8 = vld [vmem:[%s3317_s4 + $0x8] sm:$0xff] }
  0xe6   :  { %v209_v49 = vpop.permute.xlu1 %208  ;;  %v299_v39 = vpop.permute.xlu2 %298  ;;  %v659_v12 = vpack.c.bf16 %v1596_v34, %v1595_v9  ;;  %1757 = vpow2.f32 %v533_v17  ;;  %v535_v46 = vmul.f32 1.442695, %v457_v3  ;;  %738 = vperm.xlu2 %1722, %v716_v8   ;;  %v894_v29 = vunpack.c.h.b16 %v692_v25  ;;  %v719_v9 = vld [vmem:[%s3317_s4 + $0x20] sm:$0xff] }
  0xe7   :  { %v271_v4 = vadd.f32 %v209_v49, %v2162_v40  ;;  %v272_v10 = vadd.f32 %v209_v49, %v2169_v45  ;;  %v365_v38 = vmul.f32 %v2116_v60, %v299_v39  ;;  %v366_v62 = vmul.f32 %v2118_v61, %v299_v39  ;;  %941 = vmatpush.bf16.msra.mxu0 %v917_v54 }
  0xe8   :  { %1685 = vmatpush.bf16.msra.mxu2 %v917_v54  ;;  %990 = vmatpush.bf16.msra.mxu1 %v918_v2  ;;  %v691_v0 = vsel %vm675_vm7, %v2398_v32, %v659_v12  ;;  %1759 = vpow2.f32 %v535_v46  ;;  %v523_v21 = vmul.f32 1.442695, %v451_v19  ;;  %v525_v32 = vmul.f32 1.442695, %v452_v56 }
  0xe9   :  { %1693 = vmatpush.bf16.msra.mxu3 %v918_v2  ;;  %v405_v40 = vadd.f32 %v2469_v6, %v271_v4  ;;  %v406_v45 = vadd.f32 %v2473_v20, %v272_v10  ;;  %v397_v41 = vadd.f32 %v365_v38, %v263_v33  ;;  %v398_v44 = vadd.f32 %v366_v62, %v264_v43 }
  0xea   :  { %v537_v6 = vmul.f32 1.442695, %v458_v23  ;;  %778 = vperm.xlu1 %1721, %v724_v52   ;;  %v891_v22 = vunpack.c.l.b16 %v691_v0  ;;  %v892_v27 = vunpack.c.h.b16 %v691_v0  ;;  %v2565_v47 = vadd.f32 %v2417_v11, %v2213_v42  ;;  %v727_v42 = vld [vmem:[%s3317_s4 + $0x60] sm:$0xff] }
  0xeb   :  { %v2554_v20 = vpack.c.bf16 %v406_v45, %v405_v40  ;;  %v2556_v26 = vpack.c.bf16 %v398_v44, %v397_v41  ;;  %v1756_v53 = vpop.eup %1755  ;;  %v367_v24 = vmul.f32 %v2116_v60, %v2463_v63  ;;  %v368_v28 = vmul.f32 %v2118_v61, %v2463_v63  ;;  %v1341_v0 = vld [vmem:[%s3318_s5] sm:$0xff] }
  0xec   :  { %v915_v51 = vpack.c.b16 %v893_v16, %v891_v22  ;;  %v916_v30 = vpack.c.b16 %v894_v29, %v892_v27  ;;  %1761 = vpow2.f32 %v537_v6  ;;  %v1758_v25 = vpop.eup %1757  ;;  %v268_v33 = vadd.f32 %v2417_v11, %v2219_v7 }
  0xed   :  { %v453_v15 = vunpack.c.l.bf16 %v2554_v20  ;;  %v454_v18 = vunpack.c.h.bf16 %v2554_v20  ;;  %1763 = vpow2.f32 %v523_v21  ;;  %v577_v63 = vpack.c.bf16 %v1758_v25, %v1756_v53 }
  0xee   :  { %v194_v50 = vpop.permute.xlu1 %193  ;;  %942 = vmatpush.bf16.msra.mxu0 %v915_v51  ;;  %1686 = vmatpush.bf16.msra.mxu2 %v915_v51  ;;  %1765 = vpow2.f32 %v525_v32  ;;  %v445_v49 = vunpack.c.l.bf16 %v2556_v26  ;;  %v1760_v39 = vpop.eup %1759  ;;  %vm2599_vm10 = vcmp.gt.f32.partialorder %v457_v3, 0.0  ;;  %v446_v14 = vunpack.c.h.bf16 %v2556_v26  ;;  %v725_v3 = vld [vmem:[%s3317_s4 + $0x50] sm:$0xff] }
  0xef   :  { %v265_v48 = vadd.f32 %v194_v50, %v2191_v31  ;;  %v266_v59 = vadd.f32 %v194_v50, %v2201_v57  ;;  %991 = vmatpush.bf16.msra.mxu1 %v916_v30  ;;  %1694 = vmatpush.bf16.msra.mxu3 %v916_v30  ;;  %v527_v34 = vmul.f32 1.442695, %v453_v15  ;;  %v529_v54 = vmul.f32 1.442695, %v454_v18 }
  0xf0   :  { %v599_v11 = vunpack.c.l.bf16 %v577_v63  ;;  %v600_v55 = vunpack.c.h.bf16 %v577_v63  ;;  %753 = vperm.xlu2 %1722, %v719_v9   ;;  %vm2606_vm11 = vcmp.gt.f32.partialorder %v458_v23, 0.0  ;;  %vm2612_vm12 = vcmp.gt.f32.partialorder %v451_v19, 0.0 }
  0xf1   :  { %v399_v31 = vadd.f32 %v367_v24, %v265_v48  ;;  %v400_v2 = vadd.f32 %v368_v28, %v266_v59  ;;  %1767 = vpow2.f32 %v527_v34  ;;  %vm2618_vm13 = vcmp.gt.f32.partialorder %v452_v56, 0.0  ;;  %v722_v56 = vld [vmem:[%s3317_s4 + $0x38] sm:$0xff]  ;;  %vm674_vm1 = vmpackc.low %vm2606_vm11, %vm2599_vm10 }
  0xf2   :  { %793 = vperm.xlu1 %1721, %v727_v42   ;;  %v1762_v17 = vpop.eup %1761  ;;  %1769 = vpow2.f32 %v529_v54  ;;  %v1591_v52 = vadd.f32 -1.0, %v599_v11  ;;  %v1592_v43 = vadd.f32 -1.0, %v600_v55  ;;  %v511_v45 = vmul.f32 1.442695, %v445_v49  ;;  %vm671_vm2 = vmpackc.low %vm2618_vm13, %vm2612_vm12 }
  0xf3   :  { %v2595_v4 = vpack.c.bf16 %v400_v2, %v399_v31  ;;  %v1764_v10 = vpop.eup %1763  ;;  %v578_v62 = vpack.c.bf16 %v1762_v17, %v1760_v39  ;;  %v261_v46 = vadd.f32 %v2481_v35, %v2205_v36  ;;  %vm2634_vm14 = vcmp.gt.f32.partialorder %v453_v15, 0.0 }
  0xf4   :  { %v1766_v12 = vpop.eup %1765  ;;  %v657_v19 = vpack.c.bf16 %v1592_v43, %v1591_v52  ;;  %vm2638_vm15 = vcmp.gt.f32.partialorder %v454_v18, 0.0  ;;  %v513_v32 = vmul.f32 1.442695, %v446_v14  ;;  %1771 = vpow2.f32 %v511_v45 }
  0xf5   :  { %v447_v23 = vunpack.c.l.bf16 %v2595_v4  ;;  %v448_v40 = vunpack.c.h.bf16 %v2595_v4  ;;  %v601_v41 = vunpack.c.l.bf16 %v578_v62  ;;  %v602_v8 = vunpack.c.h.bf16 %v578_v62  ;;  %vm672_vm3 = vmpackc.low %vm2638_vm15, %vm2634_vm14 }
  0xf6   :  { %v575_v44 = vpack.c.bf16 %v1766_v12, %v1764_v10  ;;  %v689_v50 = vsel %vm673_vm0, %v2483_v13, %v657_v19  ;;  %v262_v52 = vadd.f32 %v2481_v35, %v2209_v58  ;;  %vm2740_vm10 = vcmp.gt.f32.partialorder %v445_v49, 0.0 }
  0xf7   :  { %v307_v6 = vpop.permute.xlu1 %306  ;;  %v515_v29 = vmul.f32 1.442695, %v447_v23  ;;  %v517_v21 = vmul.f32 1.442695, %v448_v40  ;;  %v1768_v51 = vpop.eup %1767  ;;  %v1593_v15 = vadd.f32 -1.0, %v601_v41  ;;  %v1594_v53 = vadd.f32 -1.0, %v602_v8 }
  0xf8   :  { %v369_v36 = vmul.f32 %v2116_v60, %v307_v6  ;;  %v370_v30 = vmul.f32 %v2118_v61, %v307_v6  ;;  %v1770_v24 = vpop.eup %1769  ;;  %v595_v18 = vunpack.c.l.bf16 %v575_v44  ;;  %v596_v25 = vunpack.c.h.bf16 %v575_v44  ;;  %768 = vperm.xlu2 %1722, %v722_v56   ;;  %v1343_v41 = vld [vmem:[%s3318_s5 + $0x10] sm:$0xff] }
  0xf9   :  { %v658_v59 = vpack.c.bf16 %v1594_v53, %v1593_v15  ;;  %1773 = vpow2.f32 %v515_v29  ;;  %v887_v42 = vunpack.c.l.b16 %v689_v50  ;;  %v576_v9 = vpack.c.bf16 %v1770_v24, %v1768_v51  ;;  %v1346_v53 = vld [vmem:[%s3318_s5 + $0x28] sm:$0xff] }
  0xfa   :  { %v401_v28 = vadd.f32 %v369_v36, %v2565_v47  ;;  %v402_v48 = vadd.f32 %v370_v30, %v268_v33  ;;  %1359 = vperm.xlu1 %1721, %v1341_v0   ;;  %v1587_v63 = vadd.f32 -1.0, %v595_v18  ;;  %v1588_v34 = vadd.f32 -1.0, %v596_v25  ;;  %v1772_v55 = vpop.eup %1771  ;;  %v728_v24 = vld [vmem:[%s3317_s4 + $0x68] sm:$0xff] }
  0xfb   :  { %v690_v54 = vsel %vm674_vm1, %v2515_v1, %v658_v59  ;;  %v888_v31 = vunpack.c.h.b16 %v689_v50  ;;  %1775 = vpow2.f32 %v517_v21  ;;  %v597_v2 = vunpack.c.l.bf16 %v576_v9 }
  0xfc   :  { %v2660_v13 = vpack.c.bf16 %v402_v48, %v401_v28  ;;  %v889_v47 = vunpack.c.l.b16 %v690_v54  ;;  %v890_v33 = vunpack.c.h.b16 %v690_v54  ;;  %v598_v57 = vunpack.c.h.bf16 %v576_v9 }
  0xfd   :  { %v655_v39 = vpack.c.bf16 %v1588_v34, %v1587_v63  ;;  %1777 = vpow2.f32 %v513_v32  ;;  %v1589_v38 = vadd.f32 -1.0, %v597_v2  ;;  %vm2701_vm4 = vcmp.gt.f32.partialorder %v447_v23, 0.0 }
  0xfe   :  { %v449_v7 = vunpack.c.l.bf16 %v2660_v13  ;;  %v450_v11 = vunpack.c.h.bf16 %v2660_v13  ;;  %v913_v17 = vpack.c.b16 %v889_v47, %v887_v42  ;;  %v914_v37 = vpack.c.b16 %v890_v33, %v888_v31 }
  0xff   :  { %v295_v10 = vpop.permute.xlu1 %294  ;;  %v1590_v62 = vadd.f32 -1.0, %v598_v57  ;;  %v1774_v1 = vpop.eup %1773  ;;  %v687_v45 = vsel %vm671_vm2, %v2461_v5, %v655_v39  ;;  %vm2707_vm5 = vcmp.gt.f32.partialorder %v448_v40, 0.0  ;;  %vm2746_vm11 = vcmp.gt.f32.partialorder %v446_v14, 0.0 }
 0x100   :  { %v363_v43 = vmul.f32 %v2116_v60, %v295_v10  ;;  %v364_v12 = vmul.f32 %v2118_v61, %v295_v10  ;;  %943 = vmatpush.bf16.msra.mxu0 %v913_v17  ;;  %1687 = vmatpush.bf16.msra.mxu2 %v913_v17  ;;  %v519_v61 = vmul.f32 1.442695, %v449_v7  ;;  %v521_v5 = vmul.f32 1.442695, %v450_v11  ;;  %vm669_vm8 = vmpackc.low %vm2707_vm5, %vm2701_vm4 }
 0x101   :  { %v656_v16 = vpack.c.bf16 %v1590_v62, %v1589_v38  ;;  %v1776_v8 = vpop.eup %1775  ;;  %992 = vmatpush.bf16.msra.mxu1 %v914_v37  ;;  %1695 = vmatpush.bf16.msra.mxu3 %v914_v37  ;;  %v883_v19 = vunpack.c.l.b16 %v687_v45  ;;  %v884_v44 = vunpack.c.h.b16 %v687_v45  ;;  %vm2713_vm6 = vcmp.gt.f32.partialorder %v449_v7, 0.0  ;;  %v1342_v7 = vld [vmem:[%s3318_s5 + $0x8] sm:$0xff]  ;;  %vm668_vm14 = vmpackc.low %vm2746_vm11, %vm2740_vm10 }
 0x102   :  { %v395_v58 = vadd.f32 %v363_v43, %v261_v46  ;;  %v396_v60 = vadd.f32 %v364_v12, %v262_v52  ;;  %v573_v0 = vpack.c.bf16 %v1776_v8, %v1774_v1  ;;  %1369 = vperm.xlu1 %1721, %v1343_v41   ;;  %783 = vperm.xlu2 %1722, %v725_v3   ;;  %1779 = vpow2.f32 %v519_v61 }
 0x103   :  { %v688_v35 = vsel %vm672_vm3, %v2554_v20, %v656_v16  ;;  %v1778_v56 = vpop.eup %1777  ;;  %1781 = vpow2.f32 %v521_v5  ;;  %vm2719_vm7 = vcmp.gt.f32.partialorder %v450_v11, 0.0  ;;  %v1352_v5 = vld [vmem:[%s3318_s5 + $0x58] sm:$0xff] }
 0x104   :  { %v2689_v46 = vpack.c.bf16 %v396_v60, %v395_v58  ;;  %v885_v6 = vunpack.c.l.b16 %v688_v35  ;;  %v886_v22 = vunpack.c.h.b16 %v688_v35  ;;  %v591_v27 = vunpack.c.l.bf16 %v573_v0  ;;  %vm670_vm9 = vmpackc.low %vm2719_vm7, %vm2713_vm6  ;;  %v1344_v35 = vld [vmem:[%s3318_s5 + $0x18] sm:$0xff] }
 0x105   :  { %v592_v29 = vunpack.c.h.bf16 %v573_v0  ;;  %v572_v15 = vpack.c.bf16 %v1778_v56, %v1772_v55  ;;  %v1349_v55 = vld [vmem:[%s3318_s5 + $0x40] sm:$0xff] }
 0x106   :  { %v911_v21 = vpack.c.b16 %v885_v6, %v883_v19  ;;  %v912_v32 = vpack.c.b16 %v886_v22, %v884_v44  ;;  %v443_v51 = vunpack.c.l.bf16 %v2689_v46  ;;  %v444_v20 = vunpack.c.h.bf16 %v2689_v46 }
 0x107   :  { %v1583_v18 = vadd.f32 -1.0, %v591_v27  ;;  %v1584_v25 = vadd.f32 -1.0, %v592_v29  ;;  %v589_v59 = vunpack.c.l.bf16 %v572_v15  ;;  %v590_v42 = vunpack.c.h.bf16 %v572_v15  ;;  %v1675_v27 = vld [vmem:[%s3316_s3] sm:$0xff]  ;;  %v1677_v15 = vld [vmem:[%s3316_s3 + $0x10] sm:$0xff] }
 0x108   :  { %944 = vmatpush.bf16.msra.mxu0 %v911_v21  ;;  %1688 = vmatpush.bf16.msra.mxu2 %v911_v21  ;;  %v507_v36 = vmul.f32 1.442695, %v443_v51  ;;  %v509_v30 = vmul.f32 1.442695, %v444_v20  ;;  %v1780_v50 = vpop.eup %1779  ;;  %vm2751_vm12 = vcmp.gt.f32.partialorder %v443_v51, 0.0  ;;  %vm2755_vm13 = vcmp.gt.f32.partialorder %v444_v20, 0.0 }
 0x109   :  { %993 = vmatpush.bf16.msra.mxu1 %v912_v32  ;;  %1696 = vmatpush.bf16.msra.mxu3 %v912_v32  ;;  %v1782_v28 = vpop.eup %1781  ;;  %v653_v31 = vpack.c.bf16 %v1584_v25, %v1583_v18  ;;  %v1581_v57 = vadd.f32 -1.0, %v589_v59  ;;  %v1582_v39 = vadd.f32 -1.0, %v590_v42  ;;  %vm667_vm15 = vmpackc.low %vm2755_vm13, %vm2751_vm12  ;;  %v1679_v29 = vld [vmem:[%s3316_s3 + $0x20] sm:$0xff]  ;;  %v1347_v21 = vld [vmem:[%s3318_s5 + $0x30] sm:$0xff] }
 0x10a   :  { %1783 = vpow2.f32 %v507_v36  ;;  %1384 = vperm.xlu1 %1721, %v1346_v53   ;;  %798 = vperm.xlu2 %1722, %v728_v24   ;;  %v574_v48 = vpack.c.bf16 %v1782_v28, %v1780_v50  ;;  %v1350_v32 = vld [vmem:[%s3318_s5 + $0x48] sm:$0xff]  ;;  %v1353_v36 = vld [vmem:[%s3318_s5 + $0x60] sm:$0xff]  ;;  %v1681_v53 = vld [vmem:[%s3316_s3 + $0x30] sm:$0xff]  ;;  %v744_v28 = vpop.permute.xlu0 %743 }
 0x10b   :  { %1785 = vpow2.f32 %v509_v30  ;;  %v685_v37 = vsel %vm669_vm8, %v2595_v4, %v653_v31  ;;  %v652_v43 = vpack.c.bf16 %v1582_v39, %v1581_v57  ;;  %v1676_v51 = vld [vmem:[%s3316_s3 + $0x8] sm:$0xff]  ;;  %v1356_v30 = vld [vmem:[%s3318_s5 + $0x78] sm:$0xff] }
 0x10c   :  { %v593_v34 = vunpack.c.l.bf16 %v574_v48  ;;  %v594_v54 = vunpack.c.h.bf16 %v574_v48  ;;  %v879_v12 = vunpack.c.l.b16 %v685_v37  ;;  %v880_v41 = vunpack.c.h.b16 %v685_v37  ;;  %v1680_v20 = vld [vmem:[%s3316_s3 + $0x28] sm:$0xff]  ;;  %v1678_v24 = vld [vmem:[%s3316_s3 + $0x18] sm:$0xff] }
 0x10d   :  { %v684_v61 = vsel %vm668_vm14, %v2556_v26, %v652_v43  ;;  %v1682_v50 = vld [vmem:[%s3316_s3 + $0x38] sm:$0xff]  ;;  %s1887_s3 = smov [#allocation3]  }
 0x10e   :  { %v1585_v40 = vadd.f32 -1.0, %v593_v34  ;;  %v1586_v2 = vadd.f32 -1.0, %v594_v54  ;;  %v877_v44 = vunpack.c.l.b16 %v684_v61  ;;  %v878_v56 = vunpack.c.h.b16 %v684_v61 }
 0x110   :  { %v1784_v33 = vpop.eup %1783  ;;  %v654_v11 = vpack.c.bf16 %v1586_v2, %v1585_v40 }
 0x111   :  { %v1786_v17 = vpop.eup %1785 }
 0x112   :  { %v571_v10 = vpack.c.bf16 %v1786_v17, %v1784_v33  ;;  %1399 = vperm.xlu1 %1721, %v1349_v55   ;;  %1364 = vperm.xlu2 %1722, %v1342_v7   ;;  %v686_v4 = vsel %vm670_vm9, %v2660_v13, %v654_v11  ;;  %v2818_v42 = vpop.permute.xlu0 %758 }
 0x113   :  { %v881_v45 = vunpack.c.l.b16 %v686_v4  ;;  %v882_v49 = vunpack.c.h.b16 %v686_v4 }
 0x114   :  { %v587_v1 = vunpack.c.l.bf16 %v571_v10  ;;  %v588_v52 = vunpack.c.h.bf16 %v571_v10 }
 0x115   :  { %v909_v58 = vpack.c.b16 %v881_v45, %v879_v12  ;;  %v910_v60 = vpack.c.b16 %v882_v49, %v880_v41 }
 0x116   :  { %v1579_v16 = vadd.f32 -1.0, %v587_v1  ;;  %v1580_v8 = vadd.f32 -1.0, %v588_v52 }
 0x117   :  { %945 = vmatpush.bf16.msra.mxu0 %v909_v58  ;;  %1689 = vmatpush.bf16.msra.mxu2 %v909_v58 }
 0x118   :  { %v651_v13 = vpack.c.bf16 %v1580_v8, %v1579_v16  ;;  %994 = vmatpush.bf16.msra.mxu1 %v910_v60  ;;  %1697 = vmatpush.bf16.msra.mxu3 %v910_v60 }
 0x11a   :  { %v683_v19 = vsel %vm667_vm15, %v2689_v46, %v651_v13  ;;  %1414 = vperm.xlu1 %1721, %v1352_v5   ;;  %1374 = vperm.xlu2 %1722, %v1344_v35   ;;  %v1355_v46 = vld [vmem:[%s3318_s5 + $0x70] sm:$0xff]  ;;  %v774_v40 = vpop.permute.xlu0 %773  ;;  %s1568_s5 = sshll.u32 %s1887_s3, 4  ;;  %s1569_s5 = int_to_ptr.vmem [resolvable:$true] %s1568_s5 }
 0x11b   :  { %v875_v26 = vunpack.c.l.b16 %v683_v19  ;;  %v876_v0 = vunpack.c.h.b16 %v683_v19 }
 0x11d   :  { %v907_v6 = vpack.c.b16 %v877_v44, %v875_v26  ;;  %v908_v22 = vpack.c.b16 %v878_v56, %v876_v0 }
 0x11f   :  { %946 = vmatpush.bf16.msra.mxu0 %v907_v6  ;;  %1690 = vmatpush.bf16.msra.mxu2 %v907_v6 }
 0x120   :  { %995 = vmatpush.bf16.msra.mxu1 %v908_v22  ;;  %1698 = vmatpush.bf16.msra.mxu3 %v908_v22 }
 0x122   :  { %947 = vmatmul.bf16.vlgmr.msra.gmra.mxu0 %v1675_v27  ;;  %967 = vmatmul.bf16.vlgmr.msra.gmra.mxu2 %v1679_v29 }
 0x123   :  { %996 = vmatmul.bf16.vlgmr.msra.gmra.mxu1 %v1675_v27  ;;  %1016 = vmatmul.bf16.vlgmr.msra.gmra.mxu3 %v1679_v29 }
 0x124   :  { %1429 = vperm.xlu1 %1721, %v1355_v46   ;;  %1389 = vperm.xlu2 %1722, %v1347_v21  }
 0x12c   :  { %1404 = vperm.xlu2 %1722, %v1350_v32  }
 0x132   :  { %952 = vmatmul.bf16.gmra.mxu0 %v1676_v51  ;;  %972 = vmatmul.bf16.gmra.mxu2 %v1680_v20 }
 0x133   :  { %1001 = vmatmul.bf16.gmra.mxu1 %v1676_v51  ;;  %1021 = vmatmul.bf16.gmra.mxu3 %v1680_v20 }
 0x134   :  { %1419 = vperm.xlu2 %1722, %v1353_v36  }
 0x13c   :  { %1434 = vperm.xlu2 %1722, %v1356_v30  }
 0x140   :  { %v739_v48 = vpop.permute.xlu2 %738 }
 0x141   :  { %v734_v18 = vpop.permute.xlu1 %733 }
 0x142   :  { %957 = vmatmul.bf16.gmra.mxu0 %v1677_v15  ;;  %977 = vmatmul.bf16.gmra.mxu2 %v1681_v53 }
 0x143   :  { %1006 = vmatmul.bf16.gmra.mxu1 %v1677_v15  ;;  %1026 = vmatmul.bf16.gmra.mxu3 %v1681_v53 }
 0x149   :  { %v2814_v25 = vpop.permute.xlu1 %748 }
 0x14a   :  { %v2820_v34 = vpop.permute.xlu2 %753 }
 0x151   :  { %v2816_v59 = vpop.permute.xlu1 %763 }
 0x152   :  { %962 = vmatmul.bf16.gmra.mxu0 %v1678_v24  ;;  %982 = vmatmul.bf16.gmra.mxu2 %v1682_v50  ;;  %v2824_v37 = vpop.permute.xlu2 %768 }
 0x153   :  { %1011 = vmatmul.bf16.gmra.mxu1 %v1678_v24  ;;  %1031 = vmatmul.bf16.gmra.mxu3 %v1682_v50 }
 0x15c   :  { %v779_v54 = vpop.permute.xlu1 %778  ;;  %v784_v5 = vpop.permute.xlu2 %783 }
 0x164   :  { %v2832_v1 = vpop.permute.xlu1 %793 }
 0x16c   :  { %v2852_v56 = vpop.permute.xlu1 %1359 }
 0x19f   :  { %v948_v9 = vpop.f32.mrf.mxu0 }
 0x1a0   :  { %v997_v63 = vpop.f32.mrf.mxu1  ;;  %v949_v31 = vadd.f32 %v948_v9, %v734_v18 }
 0x1a1   :  { %v998_v47 = vadd.f32 %v997_v63, %v734_v18 }
 0x1a3   :  { %v2822_v7 = vpack.c.bf16 %v998_v47, %v949_v31 }
 0x1a5   :  { %v968_v23 = vpop.f32.mrf.mxu2  ;;  %v1053_v38 = vunpack.c.l.bf16 %v2822_v7  ;;  %v1054_v62 = vunpack.c.h.bf16 %v2822_v7 }
 0x1a6   :  { %v1017_v33 = vpop.f32.mrf.mxu3  ;;  %v969_v39 = vadd.f32 %v968_v23, %v774_v40  ;;  %v2870_v23 = vpop.permute.xlu1 %1369 }
 0x1a7   :  { %v950_v2 = vpop.f32.mrf.mxu0  ;;  %v1018_v55 = vadd.f32 %v1017_v33, %v774_v40  ;;  %v1117_v45 = vmul.f32 1.442695, %v1053_v38  ;;  %v1119_v49 = vmul.f32 1.442695, %v1054_v62  ;;  %vm2884_vm0 = vcmp.gt.f32.partialorder %v1053_v38, 0.0 }
 0x1a8   :  { %v999_v57 = vpop.f32.mrf.mxu1  ;;  %v951_v17 = vadd.f32 %v950_v2, %v739_v48  ;;  %vm2890_vm1 = vcmp.gt.f32.partialorder %v1054_v62, 0.0 }
 0x1a9   :  { %v1000_v11 = vadd.f32 %v999_v57, %v739_v48  ;;  %v2826_v10 = vpack.c.bf16 %v1018_v55, %v969_v39  ;;  %1787 = vpow2.f32 %v1117_v45  ;;  %v2862_v48 = vpop.permute.xlu2 %798  ;;  %vm1277_vm4 = vmpackc.low %vm2890_vm1, %vm2884_vm0 }
 0x1aa   :  { %1789 = vpow2.f32 %v1119_v49 }
 0x1ab   :  { %v2830_v4 = vpack.c.bf16 %v1000_v11, %v951_v17  ;;  %v1069_v52 = vunpack.c.l.bf16 %v2826_v10  ;;  %v1070_v41 = vunpack.c.h.bf16 %v2826_v10 }
 0x1ad   :  { %v970_v43 = vpop.f32.mrf.mxu2  ;;  %v1055_v3 = vunpack.c.l.bf16 %v2830_v4  ;;  %v1056_v8 = vunpack.c.h.bf16 %v2830_v4  ;;  %v1149_v58 = vmul.f32 1.442695, %v1069_v52  ;;  %v1151_v61 = vmul.f32 1.442695, %v1070_v41 }
 0x1ae   :  { %v1019_v12 = vpop.f32.mrf.mxu3  ;;  %v971_v60 = vadd.f32 %v970_v43, %v779_v54  ;;  %vm2902_vm2 = vcmp.gt.f32.partialorder %v1069_v52, 0.0  ;;  %vm2908_vm3 = vcmp.gt.f32.partialorder %v1070_v41, 0.0  ;;  %v789_v41 = vpop.permute.xlu0 %788 }
 0x1af   :  { %v953_v14 = vpop.f32.mrf.mxu0  ;;  %v1020_v13 = vadd.f32 %v1019_v12, %v779_v54  ;;  %v1121_v35 = vmul.f32 1.442695, %v1055_v3  ;;  %v1123_v44 = vmul.f32 1.442695, %v1056_v8  ;;  %1791 = vpow2.f32 %v1149_v58  ;;  %v1788_v29 = vpop.eup %1787  ;;  %vm1285_vm7 = vmpackc.low %vm2908_vm3, %vm2902_vm2 }
 0x1b0   :  { %v1002_v16 = vpop.f32.mrf.mxu1  ;;  %v954_v19 = vadd.f32 %v953_v14, %v744_v28  ;;  %1793 = vpow2.f32 %v1151_v61  ;;  %v1790_v46 = vpop.eup %1789  ;;  %vm2923_vm5 = vcmp.gt.f32.partialorder %v1055_v3, 0.0  ;;  %vm2929_vm6 = vcmp.gt.f32.partialorder %v1056_v8, 0.0 }
 0x1b1   :  { %v1003_v26 = vadd.f32 %v1002_v16, %v744_v28  ;;  %v2850_v0 = vpack.c.bf16 %v1020_v13, %v971_v60  ;;  %1795 = vpow2.f32 %v1121_v35  ;;  %v1181_v53 = vpack.c.bf16 %v1790_v46, %v1788_v29  ;;  %vm1278_vm8 = vmpackc.low %vm2929_vm6, %vm2923_vm5 }
 0x1b2   :  { %1797 = vpow2.f32 %v1123_v44 }
 0x1b3   :  { %v2854_v6 = vpack.c.bf16 %v1003_v26, %v954_v19  ;;  %v1071_v21 = vunpack.c.l.bf16 %v2850_v0  ;;  %v1072_v20 = vunpack.c.h.bf16 %v2850_v0  ;;  %v1197_v33 = vunpack.c.l.bf16 %v1181_v53  ;;  %v2880_v26 = vpop.permute.xlu2 %1364 }
 0x1b4   :  { %v1198_v40 = vunpack.c.h.bf16 %v1181_v53 }
 0x1b5   :  { %v973_v22 = vpop.f32.mrf.mxu2  ;;  %v1792_v36 = vpop.eup %1791  ;;  %v1057_v30 = vunpack.c.l.bf16 %v2854_v6  ;;  %v1058_v24 = vunpack.c.h.bf16 %v2854_v6  ;;  %v1153_v9 = vmul.f32 1.442695, %v1071_v21  ;;  %v1155_v54 = vmul.f32 1.442695, %v1072_v20 }
 0x1b6   :  { %v1022_v27 = vpop.f32.mrf.mxu3  ;;  %v1794_v15 = vpop.eup %1793  ;;  %v974_v17 = vadd.f32 %v973_v22, %v784_v5  ;;  %v1643_v14 = vadd.f32 -1.0, %v1197_v33  ;;  %v1644_v16 = vadd.f32 -1.0, %v1198_v40  ;;  %vm2954_vm9 = vcmp.gt.f32.partialorder %v1071_v21, 0.0 }
 0x1b7   :  { %v955_v32 = vpop.f32.mrf.mxu0  ;;  %v1796_v28 = vpop.eup %1795  ;;  %v1189_v31 = vpack.c.bf16 %v1794_v15, %v1792_v36  ;;  %v1125_v47 = vmul.f32 1.442695, %v1057_v30  ;;  %1799 = vpow2.f32 %v1153_v9  ;;  %v1023_v11 = vadd.f32 %v1022_v27, %v784_v5 }
 0x1b8   :  { %v1004_v51 = vpop.f32.mrf.mxu1  ;;  %v956_v50 = vadd.f32 %v955_v32, %v2814_v25  ;;  %v1798_v63 = vpop.eup %1797  ;;  %1801 = vpow2.f32 %v1155_v54  ;;  %v1261_v46 = vpack.c.bf16 %v1644_v16, %v1643_v14  ;;  %vm2960_vm10 = vcmp.gt.f32.partialorder %v1072_v20, 0.0 }
 0x1b9   :  { %v1005_v18 = vadd.f32 %v1004_v51, %v2814_v25  ;;  %v1127_v25 = vmul.f32 1.442695, %v1058_v24  ;;  %v1182_v57 = vpack.c.bf16 %v1798_v63, %v1796_v28  ;;  %v1213_v43 = vunpack.c.l.bf16 %v1189_v31  ;;  %vm1286_vm13 = vmpackc.low %vm2960_vm10, %vm2954_vm9 }
 0x1ba   :  { %v1214_v12 = vunpack.c.h.bf16 %v1189_v31  ;;  %1803 = vpow2.f32 %v1125_v47  ;;  %v2878_v35 = vpack.c.bf16 %v1023_v11, %v974_v17  ;;  %v1293_v33 = vsel %vm1277_vm4, %v2822_v7, %v1261_v46 }
 0x1bb   :  { %v2874_v2 = vpack.c.bf16 %v1005_v18, %v956_v50  ;;  %1805 = vpow2.f32 %v1127_v25  ;;  %v1199_v60 = vunpack.c.l.bf16 %v1182_v57  ;;  %v1200_v13 = vunpack.c.h.bf16 %v1182_v57  ;;  %v2898_v50 = vpop.permute.xlu1 %1384 }
 0x1bc   :  { %v1659_v5 = vadd.f32 -1.0, %v1213_v43  ;;  %v1660_v44 = vadd.f32 -1.0, %v1214_v12  ;;  %v1073_v28 = vunpack.c.l.bf16 %v2878_v35  ;;  %v1074_v63 = vunpack.c.h.bf16 %v2878_v35 }
 0x1bd   :  { %v975_v39 = vpop.f32.mrf.mxu2  ;;  %v1059_v58 = vunpack.c.l.bf16 %v2874_v2  ;;  %v1060_v61 = vunpack.c.h.bf16 %v2874_v2  ;;  %v1800_v19 = vpop.eup %1799  ;;  %v1645_v36 = vadd.f32 -1.0, %v1199_v60  ;;  %v1646_v15 = vadd.f32 -1.0, %v1200_v13 }
 0x1be   :  { %v1024_v55 = vpop.f32.mrf.mxu3  ;;  %v1802_v22 = vpop.eup %1801  ;;  %v1269_v9 = vpack.c.bf16 %v1660_v44, %v1659_v5  ;;  %v1157_v7 = vmul.f32 1.442695, %v1073_v28  ;;  %v976_v3 = vadd.f32 %v975_v39, %v789_v41  ;;  %v1310_v29 = vunpack.c.h.bf16 %v1293_v33 }
 0x1bf   :  { %v958_v45 = vpop.f32.mrf.mxu0  ;;  %v1129_v32 = vmul.f32 1.442695, %v1059_v58  ;;  %v1131_v53 = vmul.f32 1.442695, %v1060_v61  ;;  %v1190_v25 = vpack.c.bf16 %v1802_v22, %v1800_v19  ;;  %v1025_v12 = vadd.f32 %v1024_v55, %v789_v41  ;;  %v2949_v19 = vpop.permute.xlu2 %1374 }
 0x1c0   :  { %v1007_v49 = vpop.f32.mrf.mxu1  ;;  %v1804_v51 = vpop.eup %1803  ;;  %v959_v52 = vadd.f32 %v958_v45, %v2820_v34  ;;  %v1309_v45 = vunpack.c.l.bf16 %v1293_v33  ;;  %v1301_v8 = vsel %vm1285_vm7, %v2826_v10, %v1269_v9  ;;  %vm2967_vm11 = vcmp.gt.f32.partialorder %v1057_v30, 0.0 }
 0x1c1   :  { %v1806_v38 = vpop.eup %1805  ;;  %v1008_v54 = vadd.f32 %v1007_v49, %v2820_v34  ;;  %1807 = vpow2.f32 %v1129_v32  ;;  %v1262_v34 = vpack.c.bf16 %v1646_v15, %v1645_v36  ;;  %v1159_v49 = vmul.f32 1.442695, %v1074_v63 }
 0x1c2   :  { %v1183_v17 = vpack.c.bf16 %v1806_v38, %v1804_v51  ;;  %1809 = vpow2.f32 %v1131_v53  ;;  %v1215_v16 = vunpack.c.l.bf16 %v1190_v25  ;;  %v1216_v60 = vunpack.c.h.bf16 %v1190_v25 }
 0x1c3   :  { %v2942_v14 = vpack.c.bf16 %v1008_v54, %v959_v52  ;;  %v1294_v39 = vsel %vm1278_vm8, %v2830_v4, %v1262_v34  ;;  %v1325_v46 = vunpack.c.l.bf16 %v1301_v8  ;;  %vm2973_vm12 = vcmp.gt.f32.partialorder %v1058_v24, 0.0  ;;  %v1400_v30 = vpop.permute.xlu1 %1399  ;;  %v804_v4 = vpop.permute.xlu0 %803 }
 0x1c4   :  { %v1201_v5 = vunpack.c.l.bf16 %v1183_v17  ;;  %v1202_v44 = vunpack.c.h.bf16 %v1183_v17  ;;  %1811 = vpow2.f32 %v1157_v7  ;;  %v2977_v20 = vpack.c.bf16 %v1025_v12, %v976_v3  ;;  %vm1279_vm14 = vmpackc.low %vm2973_vm12, %vm2967_vm11 }
 0x1c5   :  { %v978_v31 = vpop.f32.mrf.mxu2  ;;  %v1326_v51 = vunpack.c.h.bf16 %v1301_v8  ;;  %1813 = vpow2.f32 %v1159_v49  ;;  %v1061_v36 = vunpack.c.l.bf16 %v2942_v14  ;;  %v1311_v15 = vunpack.c.l.bf16 %v1294_v39 }
 0x1c6   :  { %v1027_v47 = vpop.f32.mrf.mxu3  ;;  %v1312_v53 = vunpack.c.h.bf16 %v1294_v39  ;;  %v1062_v38 = vunpack.c.h.bf16 %v2942_v14  ;;  %v1661_v24 = vadd.f32 -1.0, %v1215_v16  ;;  %v1662_v18 = vadd.f32 -1.0, %v1216_v60 }
 0x1c7   :  { %v960_v11 = vpop.f32.mrf.mxu0  ;;  %v1808_v27 = vpop.eup %1807  ;;  %v1647_v9 = vadd.f32 -1.0, %v1201_v5  ;;  %v1648_v52 = vadd.f32 -1.0, %v1202_v44  ;;  %v1438_v33 = vmul.f32 %v2852_v56, %v1310_v29  ;;  %v2985_v40 = vmul.f32 %v1400_v30, %v1325_v46 }
 0x1c8   :  { %v1009_v43 = vpop.f32.mrf.mxu1  ;;  %v961_v13 = vadd.f32 %v960_v11, %v2818_v42  ;;  %v1810_v32 = vpop.eup %1809  ;;  %v1075_v57 = vunpack.c.l.bf16 %v2977_v20  ;;  %v2988_v34 = vmul.f32 %v1400_v30, %v1326_v51  ;;  %v1133_v17 = vmul.f32 1.442695, %v1061_v36 }
 0x1c9   :  { %v1010_v22 = vadd.f32 %v1009_v43, %v2818_v42  ;;  %v1437_v42 = vmul.f32 %v2852_v56, %v1309_v45  ;;  %v1184_v25 = vpack.c.bf16 %v1810_v32, %v1808_v27  ;;  %v979_v11 = vadd.f32 %v978_v31, %v2832_v1  ;;  %v3005_v44 = vpop.permute.xlu2 %1389 }
 0x1ca   :  { %v1028_v43 = vadd.f32 %v1027_v47, %v2832_v1  ;;  %v1812_v12 = vpop.eup %1811  ;;  %v1439_v45 = vmul.f32 %v2880_v26, %v1311_v15  ;;  %v1440_v56 = vmul.f32 %v2880_v26, %v1312_v53  ;;  %v1135_v8 = vmul.f32 1.442695, %v1062_v38 }
 0x1cb   :  { %v2982_v62 = vpack.c.bf16 %v1010_v22, %v961_v13  ;;  %v1814_v16 = vpop.eup %1813  ;;  %v1270_v60 = vpack.c.bf16 %v1662_v18, %v1661_v24  ;;  %v1263_v13 = vpack.c.bf16 %v1648_v52, %v1647_v9  ;;  %v1076_v39 = vunpack.c.h.bf16 %v2977_v20 }
 0x1cc   :  { %v1203_v1 = vunpack.c.l.bf16 %v1184_v25  ;;  %v1161_v47 = vmul.f32 1.442695, %v1075_v57  ;;  %v1204_v22 = vunpack.c.h.bf16 %v1184_v25  ;;  %1815 = vpow2.f32 %v1133_v17 }
 0x1cd   :  { %v980_v54 = vpop.f32.mrf.mxu2  ;;  %v1063_v49 = vunpack.c.l.bf16 %v2982_v62  ;;  %v1064_v31 = vunpack.c.h.bf16 %v2982_v62  ;;  %v3007_v27 = vpack.c.bf16 %v1028_v43, %v979_v11  ;;  %1817 = vpow2.f32 %v1135_v8 }
 0x1ce   :  { %v1029_v41 = vpop.f32.mrf.mxu3  ;;  %v981_v29 = vadd.f32 %v980_v54, %v2862_v48  ;;  %v1191_v51 = vpack.c.bf16 %v1814_v16, %v1812_v12  ;;  %vm3025_vm15 = vcmp.gt.f32.partialorder %v1059_v58, 0.0  ;;  %vm3031_vm0 = vcmp.gt.f32.partialorder %v1060_v61, 0.0 }
 0x1cf   :  { %v963_v7 = vpop.f32.mrf.mxu0  ;;  %v1137_v46 = vmul.f32 1.442695, %v1063_v49  ;;  %v1030_v32 = vadd.f32 %v1029_v41, %v2862_v48  ;;  %v1139_v48 = vmul.f32 1.442695, %v1064_v31  ;;  %v3037_v30 = vadd.f32 %v1439_v45, %v1437_v42  ;;  %vm1280_vm1 = vmpackc.low %vm3031_vm0, %vm3025_vm15 }
 0x1d0   :  { %v1012_v3 = vpop.f32.mrf.mxu1  ;;  %v964_v5 = vadd.f32 %v963_v7, %v2816_v59  ;;  %v3039_v21 = vadd.f32 %v1440_v56, %v1438_v33  ;;  %v1302_v15 = vsel %vm1286_vm13, %v2850_v0, %v1270_v60  ;;  %v1295_v58 = vsel %vm1279_vm14, %v2854_v6, %v1263_v13 }
 0x1d1   :  { %v1013_v26 = vadd.f32 %v1012_v3, %v2816_v59  ;;  %v1649_v53 = vadd.f32 -1.0, %v1203_v1  ;;  %v1650_v24 = vadd.f32 -1.0, %v1204_v22  ;;  %1819 = vpow2.f32 %v1161_v47  ;;  %v1405_v1 = vpop.permute.xlu2 %1404 }
 0x1d2   :  { %v1163_v61 = vmul.f32 1.442695, %v1076_v39  ;;  %v3326_v52 = vunpack.c.l.bf16 %v3007_v27  ;;  %1821 = vpow2.f32 %v1137_v46  ;;  %v3046_v54 = vpack.c.bf16 %v1030_v32, %v981_v29  ;;  %v1816_v41 = vpop.eup %1815 }
 0x1d3   :  { %v3017_v59 = vpack.c.bf16 %v1013_v26, %v964_v5  ;;  %v1327_v33 = vunpack.c.l.bf16 %v1302_v15  ;;  %v1217_v0 = vunpack.c.l.bf16 %v1191_v51  ;;  %v3325_v6 = vunpack.c.h.bf16 %v3007_v27  ;;  %v1818_v25 = vpop.eup %1817 }
 0x1d4   :  { %1823 = vpow2.f32 %v1139_v48  ;;  %v1313_v3 = vunpack.c.l.bf16 %v1295_v58  ;;  %v1314_v12 = vunpack.c.h.bf16 %v1295_v58  ;;  %v1218_v45 = vunpack.c.h.bf16 %v1191_v51 }
 0x1d5   :  { %v983_v18 = vpop.f32.mrf.mxu2  ;;  %v1065_v42 = vunpack.c.l.bf16 %v3017_v59  ;;  %v1066_v17 = vunpack.c.h.bf16 %v3017_v59  ;;  %1825 = vpow2.f32 %v1163_v61  ;;  %v1328_v56 = vunpack.c.h.bf16 %v1302_v15 }
 0x1d6   :  { %v1032_v9 = vpop.f32.mrf.mxu3  ;;  %v984_v43 = vadd.f32 %v983_v18, %v804_v4  ;;  %v1264_v8 = vpack.c.bf16 %v1650_v24, %v1649_v53  ;;  %v1165_v16 = vmul.f32 1.442695, %v3326_v52  ;;  %v3323_v60 = vunpack.c.l.bf16 %v3046_v54 }
 0x1d7   :  { %v1141_v11 = vmul.f32 1.442695, %v1065_v42  ;;  %v1033_v7 = vadd.f32 %v1032_v9, %v804_v4  ;;  %v1820_v13 = vpop.eup %1819  ;;  %v1185_v47 = vpack.c.bf16 %v1818_v25, %v1816_v41  ;;  %v3322_v5 = vunpack.c.h.bf16 %v3046_v54  ;;  %v965_v48 = vpop.f32.mrf.mxu0 }
 0x1d8   :  { %v1143_v26 = vmul.f32 1.442695, %v1066_v17  ;;  %v1822_v22 = vpop.eup %1821  ;;  %v3059_v29 = vmul.f32 %v1405_v1, %v1327_v33  ;;  %v3061_v46 = vadd.f32 -1.0, %v1217_v0  ;;  %v1167_v32 = vmul.f32 1.442695, %v3325_v6  ;;  %v1014_v24 = vpop.f32.mrf.mxu1 }
 0x1d9   :  { %1827 = vpow2.f32 %v1141_v11  ;;  %v3065_v51 = vpack.c.bf16 %v1033_v7, %v984_v43  ;;  %v1441_v15 = vmul.f32 %v2870_v23, %v1313_v3  ;;  %v1442_v58 = vmul.f32 %v2870_v23, %v1314_v12  ;;  %v809_v33 = vpop.permute.xlu0 %808 }
 0x1da   :  { %v1824_v4 = vpop.eup %1823  ;;  %v3069_v53 = vadd.f32 -1.0, %v1218_v45  ;;  %1829 = vpow2.f32 %v1143_v26  ;;  %v3075_v61 = vmul.f32 %v1405_v1, %v1328_v56  ;;  %v1296_v18 = vsel %vm1280_vm1, %v2874_v2, %v1264_v8 }
 0x1db   :  { %1831 = vpow2.f32 %v1165_v16  ;;  %v1169_v9 = vmul.f32 1.442695, %v3323_v60  ;;  %v1826_v41 = vpop.eup %1825  ;;  %v1205_v23 = vunpack.c.l.bf16 %v1185_v47  ;;  %v1206_v0 = vunpack.c.h.bf16 %v1185_v47 }
 0x1dc   :  { %v1171_v10 = vmul.f32 1.442695, %v3322_v5  ;;  %v966_v55 = vadd.f32 %v965_v48, %v2824_v37  ;;  %1833 = vpow2.f32 %v1167_v32  ;;  %v1186_v25 = vpack.c.bf16 %v1824_v4, %v1822_v22 }
 0x1dd   :  { %v3321_v11 = vunpack.c.l.bf16 %v3065_v51  ;;  %v1015_v43 = vadd.f32 %v1014_v24, %v2824_v37  ;;  %v3086_v7 = vadd.f32 %v3037_v30, %v1441_v15  ;;  %v3089_v3 = vadd.f32 %v3039_v21, %v1442_v58  ;;  %v985_v48 = vpop.f32.mrf.mxu2 }
 0x1de   :  { %v1271_v12 = vpack.c.bf16 %v3069_v53, %v3061_v46  ;;  %vm3095_vm2 = vcmp.gt.f32.partialorder %v1061_v36, 0.0  ;;  %v1315_v56 = vunpack.c.l.bf16 %v1296_v18  ;;  %v1192_v8 = vpack.c.bf16 %v1826_v41, %v1820_v13 }
 0x1df   :  { %v1828_v2 = vpop.eup %1827  ;;  %1835 = vpow2.f32 %v1169_v9  ;;  %v3324_v37 = vunpack.c.h.bf16 %v3065_v51  ;;  %vm3102_vm3 = vcmp.gt.f32.partialorder %v1073_v28, 0.0  ;;  %vm3108_vm4 = vcmp.gt.f32.partialorder %v1074_v63, 0.0 }
 0x1e0   :  { %v1830_v16 = vpop.eup %1829  ;;  %v1651_v36 = vadd.f32 -1.0, %v1205_v23  ;;  %v1652_v1 = vadd.f32 -1.0, %v1206_v0  ;;  %1837 = vpow2.f32 %v1171_v10  ;;  %v3112_v13 = vpack.c.bf16 %v1015_v43, %v966_v55  ;;  %v1034_v10 = vpop.f32.mrf.mxu3  ;;  %vm1287_vm11 = vmpackc.low %vm3108_vm4, %vm3102_vm3 }
 0x1e1   :  { %v1832_v47 = vpop.eup %1831  ;;  %v1207_v26 = vunpack.c.l.bf16 %v1186_v25  ;;  %v1208_v22 = vunpack.c.h.bf16 %v1186_v25  ;;  %v1187_v32 = vpack.c.bf16 %v1830_v16, %v1828_v2  ;;  %v1173_v28 = vmul.f32 1.442695, %v3321_v11  ;;  %v1380_v60 = vpop.permute.xlu0 %1379 }
 0x1e2   :  { %v1316_v4 = vunpack.c.h.bf16 %v1296_v18  ;;  %vm3118_vm5 = vcmp.gt.f32.partialorder %v1062_v38, 0.0  ;;  %v1067_v15 = vunpack.c.l.bf16 %v3112_v13  ;;  %v1068_v58 = vunpack.c.h.bf16 %v3112_v13  ;;  %v1834_v24 = vpop.eup %1833 }
 0x1e3   :  { %v1443_v9 = vmul.f32 %v2949_v19, %v1315_v56  ;;  %v1209_v41 = vunpack.c.l.bf16 %v1187_v32  ;;  %v1210_v23 = vunpack.c.h.bf16 %v1187_v32  ;;  %v1175_v0 = vmul.f32 1.442695, %v3324_v37  ;;  %vm1281_vm8 = vmpackc.low %vm3118_vm5, %vm3095_vm2 }
 0x1e4   :  { %v1219_v18 = vunpack.c.l.bf16 %v1192_v8  ;;  %v1220_v55 = vunpack.c.h.bf16 %v1192_v8  ;;  %v1145_v38 = vmul.f32 1.442695, %v1067_v15  ;;  %v986_v25 = vadd.f32 %v985_v48, %v809_v33 }
 0x1e5   :  { %v1836_v43 = vpop.eup %1835  ;;  %v1265_v2 = vpack.c.bf16 %v1652_v1, %v1651_v36  ;;  %v1653_v16 = vadd.f32 -1.0, %v1207_v26  ;;  %v1654_v11 = vadd.f32 -1.0, %v1208_v22  ;;  %1839 = vpow2.f32 %v1173_v28 }
 0x1e6   :  { %v1838_v5 = vpop.eup %1837  ;;  %v1193_v56 = vpack.c.bf16 %v1834_v24, %v1832_v47  ;;  %1841 = vpow2.f32 %v1145_v38  ;;  %v1147_v32 = vmul.f32 1.442695, %v1068_v58  ;;  %v1035_v37 = vadd.f32 %v1034_v10, %v809_v33 }
 0x1e7   :  { %v1444_v6 = vmul.f32 %v2949_v19, %v1316_v4  ;;  %v1655_v8 = vadd.f32 -1.0, %v1209_v41  ;;  %v1656_v52 = vadd.f32 -1.0, %v1210_v23  ;;  %1843 = vpow2.f32 %v1175_v0 }
 0x1e8   :  { %vm3134_vm6 = vcmp.gt.f32.partialorder %v1075_v57, 0.0  ;;  %vm3140_vm7 = vcmp.gt.f32.partialorder %v1076_v39, 0.0  ;;  %v1665_v47 = vadd.f32 -1.0, %v1219_v18  ;;  %vm3150_vm9 = vcmp.gt.f32.partialorder %v1063_v49, 0.0 }
 0x1e9   :  { %1845 = vpow2.f32 %v1147_v32  ;;  %v3154_v57 = vpack.c.bf16 %v1035_v37, %v986_v25  ;;  %v1666_v33 = vadd.f32 -1.0, %v1220_v55  ;;  %v1297_v39 = vsel %vm1281_vm8, %v2942_v14, %v1265_v2  ;;  %v1395_v55 = vpop.permute.xlu0 %1394  ;;  %vm1288_vm2 = vmpackc.low %vm3140_vm7, %vm3134_vm6 }
 0x1ea   :  { %vm3159_vm10 = vcmp.gt.f32.partialorder %v1064_v31, 0.0  ;;  %v1266_v45 = vpack.c.bf16 %v1654_v11, %v1653_v16  ;;  %v1221_v22 = vunpack.c.l.bf16 %v1193_v56  ;;  %v1194_v28 = vpack.c.bf16 %v1838_v5, %v1836_v43 }
 0x1eb   :  { %v1083_v49 = vunpack.c.l.bf16 %v3154_v57  ;;  %v1084_v48 = vunpack.c.h.bf16 %v3154_v57  ;;  %v1840_v4 = vpop.eup %1839  ;;  %v1222_v14 = vunpack.c.h.bf16 %v1193_v56  ;;  %vm3171_vm12 = vcmp.gt.f32.partialorder %v1065_v42, 0.0  ;;  %vm1282_vm14 = vmpackc.low %vm3159_vm10, %vm3150_vm9 }
 0x1ec   :  { %vm3177_vm13 = vcmp.gt.f32.partialorder %v1066_v17, 0.0  ;;  %v1267_v11 = vpack.c.bf16 %v1656_v52, %v1655_v8  ;;  %v1842_v37 = vpop.eup %1841  ;;  %v3185_v30 = vsel %vm1287_vm11, %v2878_v35, %v1271_v12  ;;  %v1471_v21 = vadd.f32 %v3086_v7, %v1443_v9 }
 0x1ed   :  { %v1492_v42 = vadd.f32 %v3089_v3, %v1444_v6  ;;  %v1317_v63 = vunpack.c.l.bf16 %v1297_v39  ;;  %v1844_v17 = vpop.eup %1843  ;;  %v1318_v24 = vunpack.c.h.bf16 %v1297_v39  ;;  %v1298_v52 = vsel %vm1282_vm14, %v2982_v62, %v1266_v45  ;;  %vm1283_vm15 = vmpackc.low %vm3177_vm13, %vm3171_vm12  ;;  %v1415_v62 = vpop.permute.xlu1 %1414 }
 0x1ee   :  { %v1177_v46 = vmul.f32 1.442695, %v1083_v49  ;;  %v1179_v35 = vmul.f32 1.442695, %v1084_v48  ;;  %v1272_v7 = vpack.c.bf16 %v1666_v33, %v1665_v47  ;;  %v3198_v12 = vadd.f32 -1.0, %v1221_v22 }
 0x1ef   :  { %v1846_v53 = vpop.eup %1845  ;;  %v1223_v6 = vunpack.c.l.bf16 %v1194_v28  ;;  %v1224_v3 = vunpack.c.h.bf16 %v1194_v28  ;;  %v3435_v9 = vunpack.c.l.bf16 %v3007_v27  ;;  %v3438_v41 = vunpack.c.h.bf16 %v3007_v27 }
 0x1f0   :  { %v1668_v0 = vadd.f32 -1.0, %v1222_v14  ;;  %v1299_v10 = vsel %vm1283_vm15, %v3017_v59, %v1267_v11  ;;  %v1188_v18 = vpack.c.bf16 %v1846_v53, %v1842_v37  ;;  %1847 = vpow2.f32 %v1177_v46 }
 0x1f1   :  { %vm3206_vm0 = vcmp.gt.f32.partialorder %v3435_v9, 0.0  ;;  %vm3212_vm1 = vcmp.gt.f32.partialorder %v3438_v41, 0.0  ;;  %v1445_v38 = vmul.f32 %v1380_v60, %v1317_v63  ;;  %v1319_v25 = vunpack.c.l.bf16 %v1298_v52 }
 0x1f2   :  { %v1320_v43 = vunpack.c.h.bf16 %v1298_v52  ;;  %1849 = vpow2.f32 %v1179_v35  ;;  %v1446_v2 = vmul.f32 %v1380_v60, %v1318_v24  ;;  %v1195_v16 = vpack.c.bf16 %v1844_v17, %v1840_v4  ;;  %vm1289_vm8 = vmpackc.low %vm3212_vm1, %vm3206_vm0  ;;  %v1420_v60 = vpop.permute.xlu2 %1419 }
 0x1f3   :  { %v1211_v56 = vunpack.c.l.bf16 %v1188_v18  ;;  %v1212_v32 = vunpack.c.h.bf16 %v1188_v18  ;;  %v1669_v8 = vadd.f32 -1.0, %v1223_v6  ;;  %v1670_v47 = vadd.f32 -1.0, %v1224_v3 }
 0x1f4   :  { %v1321_v19 = vunpack.c.l.bf16 %v1299_v10  ;;  %v1322_v33 = vunpack.c.h.bf16 %v1299_v10  ;;  %vm3223_vm3 = vcmp.gt.f32.partialorder %v1067_v15, 0.0  ;;  %vm3229_vm4 = vcmp.gt.f32.partialorder %v1068_v58, 0.0 }
 0x1f5   :  { %v1657_v39 = vadd.f32 -1.0, %v1211_v56  ;;  %v1658_v26 = vadd.f32 -1.0, %v1212_v32  ;;  %v3234_v45 = vsel %vm1288_vm2, %v2977_v20, %v1272_v7  ;;  %v1447_v36 = vmul.f32 %v2898_v50, %v1319_v25  ;;  %vm1284_vm7 = vmpackc.low %vm3229_vm4, %vm3223_vm3 }
 0x1f6   :  { %v1448_v1 = vmul.f32 %v2898_v50, %v1320_v43  ;;  %v3445_v15 = vunpack.c.l.bf16 %v3046_v54  ;;  %v1848_v28 = vpop.eup %1847  ;;  %v3448_v58 = vunpack.c.h.bf16 %v3046_v54  ;;  %v1225_v14 = vunpack.c.l.bf16 %v1195_v16 }
 0x1f7   :  { %v1226_v20 = vunpack.c.h.bf16 %v1195_v16  ;;  %v1268_v31 = vpack.c.bf16 %v1658_v26, %v1657_v39  ;;  %v1472_v11 = vadd.f32 %v1471_v21, %v1445_v38  ;;  %v1493_v37 = vadd.f32 %v1492_v42, %v1446_v2 }
 0x1f8   :  { %vm3240_vm5 = vcmp.gt.f32.partialorder %v3445_v15, 0.0  ;;  %vm3246_vm6 = vcmp.gt.f32.partialorder %v3448_v58, 0.0  ;;  %v1850_v5 = vpop.eup %1849  ;;  %v1449_v50 = vmul.f32 %v3005_v44, %v1321_v19  ;;  %v1450_v63 = vmul.f32 %v3005_v44, %v1322_v33  ;;  %v1410_v44 = vpop.permute.xlu0 %1409 }
 0x1f9   :  { %v1273_v17 = vpack.c.bf16 %v1668_v0, %v3198_v12  ;;  %v1274_v24 = vpack.c.bf16 %v1670_v47, %v1669_v8  ;;  %v1300_v52 = vsel %vm1284_vm7, %v3112_v13, %v1268_v31  ;;  %v1196_v46 = vpack.c.bf16 %v1850_v5, %v1848_v28  ;;  %vm1290_vm9 = vmpackc.low %vm3246_vm6, %vm3240_vm5 }
 0x1fa   :  { %v1473_v35 = vadd.f32 %v1472_v11, %v1447_v36  ;;  %v1494_v53 = vadd.f32 %v1493_v37, %v1448_v1  ;;  %v1323_v7 = vunpack.c.l.bf16 %v1300_v52  ;;  %v1324_v21 = vunpack.c.h.bf16 %v1300_v52 }
 0x1fb   :  { %v1671_v42 = vadd.f32 -1.0, %v1225_v14  ;;  %v1672_v6 = vadd.f32 -1.0, %v1226_v20  ;;  %v1227_v3 = vunpack.c.l.bf16 %v1196_v46  ;;  %v1228_v9 = vunpack.c.h.bf16 %v1196_v46  ;;  %v1430_v46 = vpop.permute.xlu1 %1429 }
 0x1fc   :  { %v1474_v41 = vadd.f32 %v1473_v35, %v1449_v50  ;;  %v1495_v12 = vadd.f32 %v1494_v53, %v1450_v63  ;;  %v1451_v0 = vmul.f32 %v1395_v55, %v1323_v7  ;;  %v1452_v10 = vmul.f32 %v1395_v55, %v1324_v21 }
 0x1fd   :  { %v1329_v13 = vunpack.c.l.bf16 %v3185_v30  ;;  %v1305_v18 = vsel %vm1289_vm8, %v3007_v27, %v1273_v17  ;;  %v1673_v38 = vadd.f32 -1.0, %v1227_v3  ;;  %v1674_v25 = vadd.f32 -1.0, %v1228_v9 }
 0x1fe   :  { %v1330_v43 = vunpack.c.h.bf16 %v3185_v30  ;;  %v1331_v2 = vunpack.c.l.bf16 %v3234_v45  ;;  %v1475_v16 = vadd.f32 %v1474_v41, %v1451_v0  ;;  %v1496_v56 = vadd.f32 %v1495_v12, %v1452_v10 }
 0x1ff   :  { %v1332_v23 = vunpack.c.h.bf16 %v3234_v45  ;;  %v3451_v55 = vunpack.c.l.bf16 %v3065_v51  ;;  %v3454_v30 = vunpack.c.h.bf16 %v3065_v51  ;;  %v1275_v8 = vpack.c.bf16 %v1672_v6, %v1671_v42  ;;  %v1435_v42 = vpop.permute.xlu2 %1434 }
 0x200   :  { %v1333_v47 = vunpack.c.l.bf16 %v1305_v18  ;;  %v1306_v19 = vsel %vm1290_vm9, %v3046_v54, %v1274_v24  ;;  %v1476_v33 = vadd.f32 %v1475_v16, %v2985_v40  ;;  %v1497_v59 = vadd.f32 %v1496_v56, %v2988_v34 }
 0x201   :  { %vm3273_vm10 = vcmp.gt.f32.partialorder %v3451_v55, 0.0  ;;  %vm3279_vm11 = vcmp.gt.f32.partialorder %v3454_v30, 0.0  ;;  %v1334_v39 = vunpack.c.h.bf16 %v1305_v18  ;;  %vm3288_vm12 = vcmp.gt.f32.partialorder %v1083_v49, 0.0 }
 0x202   :  { %vm3294_vm13 = vcmp.gt.f32.partialorder %v1084_v48, 0.0  ;;  %v1276_v36 = vpack.c.bf16 %v1674_v25, %v1673_v38  ;;  %v1457_v54 = vmul.f32 %v1410_v44, %v1329_v13  ;;  %v1458_v1 = vmul.f32 %v1410_v44, %v1330_v43  ;;  %vm1291_vm14 = vmpackc.low %vm3279_vm11, %vm3273_vm10 }
 0x203   :  { %v1477_v40 = vadd.f32 %v1476_v33, %v3059_v29  ;;  %v1498_v34 = vadd.f32 %v1497_v59, %v3075_v61  ;;  %v1335_v49 = vunpack.c.l.bf16 %v1306_v19  ;;  %v1336_v15 = vunpack.c.h.bf16 %v1306_v19  ;;  %vm1292_vm15 = vmpackc.low %vm3294_vm13, %vm3288_vm12  ;;  %v1425_v29 = vpop.permute.xlu0 %1424 }
 0x204   :  { %v1307_v22 = vsel %vm1291_vm14, %v3065_v51, %v1275_v8  ;;  %v1459_v48 = vmul.f32 %v1415_v62, %v1331_v2  ;;  %v1460_v28 = vmul.f32 %v1415_v62, %v1332_v23  ;;  %v1461_v14 = vmul.f32 %v1420_v60, %v1333_v47 }
 0x205   :  { %v1478_v58 = vadd.f32 %v1477_v40, %v1457_v54  ;;  %v1499_v4 = vadd.f32 %v1498_v34, %v1458_v1  ;;  %v1462_v20 = vmul.f32 %v1420_v60, %v1334_v39  ;;  %v1308_v31 = vsel %vm1292_vm15, %v3154_v57, %v1276_v36 }
 0x206   :  { %v1337_v5 = vunpack.c.l.bf16 %v1307_v22  ;;  %v1338_v61 = vunpack.c.h.bf16 %v1307_v22  ;;  %v1463_v50 = vmul.f32 %v1425_v29, %v1335_v49  ;;  %v1464_v51 = vmul.f32 %v1425_v29, %v1336_v15 }
 0x207   :  { %v1479_v11 = vadd.f32 %v1478_v58, %v1459_v48  ;;  %v1500_v37 = vadd.f32 %v1499_v4, %v1460_v28  ;;  %v1339_v63 = vunpack.c.l.bf16 %v1308_v31  ;;  %v1340_v17 = vunpack.c.h.bf16 %v1308_v31 }
 0x208   :  { %v1465_v35 = vmul.f32 %v1430_v46, %v1337_v5  ;;  %v1466_v53 = vmul.f32 %v1430_v46, %v1338_v61 }
 0x209   :  { %v1480_v24 = vadd.f32 %v1479_v11, %v1461_v14  ;;  %v1501_v52 = vadd.f32 %v1500_v37, %v1462_v20  ;;  %v1467_v6 = vmul.f32 %v1435_v42, %v1339_v63  ;;  %v1468_v3 = vmul.f32 %v1435_v42, %v1340_v17 }
 0x20b   :  { %v1481_v7 = vadd.f32 %v1480_v24, %v1463_v50  ;;  %v1502_v21 = vadd.f32 %v1501_v52, %v1464_v51  ;;  %v1515_v2 = vpop.permute.xlu0 %1514 }
 0x20c   :  { %v1517_v62 = vperm.slane %v1515_v2, 0 }
 0x20d   :  { %v1482_v57 = vadd.f32 %v1481_v7, %v1465_v35  ;;  %v1503_v9 = vadd.f32 %v1502_v21, %v1466_v53 }
 0x20f   :  { %v1483_v44 = vadd.f32 %v1482_v57, %v1467_v6  ;;  %v1504_v41 = vadd.f32 %v1503_v9, %v1468_v3 }
 0x211   :  { %v1484_v12 = vrot.slane %v1483_v44, 4  ;;  %v1505_v0 = vrot.slane %v1504_v41, 4 }
 0x213   :  { %v1485_v10 = vadd.f32 %v1484_v12, %v1483_v44  ;;  %v1506_v13 = vadd.f32 %v1505_v0, %v1504_v41 }
 0x215   :  { %v1486_v18 = vrot.slane %v1485_v10, 2  ;;  %v1507_v38 = vrot.slane %v1506_v13, 2 }
 0x217   :  { %v1487_v25 = vadd.f32 %v1486_v18, %v1485_v10  ;;  %v1508_v43 = vadd.f32 %v1507_v38, %v1506_v13 }
 0x219   :  { %v1488_v16 = vrot.slane %v1487_v25, 1  ;;  %v1509_v56 = vrot.slane %v1508_v43, 1 }
 0x21b   :  { %v1489_v23 = vadd.f32 %v1488_v16, %v1487_v25  ;;  %v1510_v55 = vadd.f32 %v1509_v56, %v1508_v43 }
 0x21d   :  { %v1518_v27 = vadd.f32 %v1517_v62, %v1489_v23  ;;  %v1519_v30 = vadd.f32 %v1517_v62, %v1510_v55 }
 0x21f   :  { %v1531_v32 = vand.u32 2147483647, %v1518_v27  ;;  %v1532_v8 = vand.u32 2147483647, %v1519_v30  ;;  %v1527_v36 = vsub.f32 0.0, %v1518_v27  ;;  %v1528_v54 = vsub.f32 0.0, %v1519_v30 }
 0x221   :  { %v1533_v47 = vsub.f32 0.0, %v1531_v32  ;;  %v1534_v19 = vsub.f32 0.0, %v1532_v8  ;;  %v1529_v49 = vmax.f32 %v1527_v36, 0.0  ;;  %v1530_v15 = vmax.f32 %v1528_v54, 0.0 }
 0x223   :  { %v1535_v33 = vmul.f32 1.442695, %v1533_v47  ;;  %v1537_v59 = vmul.f32 1.442695, %v1534_v19 }
 0x225   :  { %1851 = vpow2.f32 %v1535_v33 }
 0x226   :  { %1853 = vpow2.f32 %v1537_v59 }
 0x22b   :  { %v1852_v60 = vpop.eup %1851 }
 0x22c   :  { %v1854_v39 = vpop.eup %1853  ;;  %v1539_v26 = vadd.f32 1.0, %v1852_v60 }
 0x22d   :  { %v1540_v45 = vadd.f32 1.0, %v1854_v39 }
 0x22e   :  { %1855 = vlog2.f32 %v1539_v26 }
 0x22f   :  { %1857 = vlog2.f32 %v1540_v45 }
 0x234   :  { %v1856_v1 = vpop.eup %1855 }
 0x235   :  { %v1858_v40 = vpop.eup %1857  ;;  %v1542_v34 = vmul.f32 0.6931472, %v1856_v1 }
 0x236   :  { %v1544_v22 = vmul.f32 0.6931472, %v1858_v40 }
 0x237   :  { %v1545_v48 = vadd.f32 %v1542_v34, %v1529_v49 }
 0x238   :  { %v1546_v28 = vadd.f32 %v1544_v22, %v1530_v15 }
 0x239   :  { %v1553_v4 = vmin.f32 %v1545_v48, 100.0 }
 0x23a   :  { %v1548_v58 = vadd.f32 %v1546_v28, %v1519_v30 }
 0x23c   :  { %v1554_v14 = vmin.f32 %v1548_v58, 100.0 }
 0x23e   :  { %v1559_v20 = vadd.f32 %v1554_v14, %v1553_v4 }
 0x240   :  { %1560 = vadd.xlane.f32.xlu1 %v1559_v20 }
 0x2b3   :  { %v1561_v31 = vpop.xlane.xlu1 %1560 }
 0x2b4   :  { %1562 = vst [vmem:[#allocation3] sm:$0x1] %v1561_v31 }
 0x2b5   :  { %1573 = dma.vmem_to_hbm [thread:$0]  %s1569_s5, 16, %s1571_s1, [#allocation4]  }
 0x2b6   :  { %1883 = dma.done.wait [#allocation4], 16  }
 0x2b7   :  { %1884 = vsyncadd [#allocation4], 4294967280 }
 0x2b8   :  { %1578 = vsyncpa [#allocation4], 1 }

</bundles_post_ra>
